<compile_context>
chip_gen: v7x
topology: tpu7x:2x2x1
jax: 0.10.0
libtpu: 0.0.40
codegen_flags: <defaults>
</compile_context>

<pallas_src>
import jax
import jax.numpy as jnp
from jax import lax
from jax.experimental import pallas as pl
from jax.experimental.pallas import tpu as pltpu


# ----------------------------------------------------------------------------- kernel
def temporal_gnn_kernel(adj_ref, xw_ref, u_ref, pool_ref, bg_ref,
                        wp_ref, wu_ref, wh_ref, bgate_ref,
                        ph_ref, pc_ref, whead_ref, bhead_ref,
                        logits_ref, h_out_ref, c_out_ref):
    f32 = jnp.float32
    bf16 = jnp.bfloat16
    T = adj_ref.shape[0]
    H = ph_ref.shape[-1]

    # hoist loop-invariant loads once (JAX does not CSE broadcasts inside the loop)
    pool = pool_ref[...]
    bg = bg_ref[...]
    wp = wp_ref[...]
    wu = wu_ref[...]
    wh = wh_ref[...]
    bgate = bgate_ref[...]
    whead = whead_ref[...]
    bhead = bhead_ref[...]

    def step(t, carry):
        h, c = carry
        # --- backbone: GCN layer (x_t @ W_g already hoisted to the wrapper) ---- (N, H)
        z = jnp.maximum(
            jnp.dot(adj_ref[t], xw_ref[t], preferred_element_type=f32) + bg, 0.0)

        # --- neck: per-graph mean pool + LSTM gates (3 accumulating matmuls) --- (B, 4H)
        pooled = jnp.dot(pool, z.astype(bf16), preferred_element_type=f32)       # (B, H)
        gates = (jnp.dot(pooled.astype(bf16), wp, preferred_element_type=f32)
                 + jnp.dot(u_ref[t].astype(bf16), wu, preferred_element_type=f32)
                 + jnp.dot(h.astype(bf16), wh, preferred_element_type=f32)
                 + bgate)

        i_g = jax.nn.sigmoid(gates[:, 0 * H:1 * H])
        f_g = jax.nn.sigmoid(gates[:, 1 * H:2 * H])
        g_g = jnp.tanh(gates[:, 2 * H:3 * H])
        o_g = jax.nn.sigmoid(gates[:, 3 * H:4 * H])

        c_new = f_g * c + i_g * g_g
        h_new = o_g * jnp.tanh(c_new)            # fused_emb == h_new

        # --- head: linear classifier; (T, B, C) block stays in VMEM, one HBM writeback
        logits_ref[t] = (jnp.dot(h_new.astype(bf16), whead,
                                 preferred_element_type=f32) + bhead)
        return h_new, c_new

    h_fin, c_fin = lax.fori_loop(0, T, step, (ph_ref[...], pc_ref[...]), unroll=True)
    h_out_ref[...] = h_fin
    c_out_ref[...] = c_fin


# ----------------------------------------------------------------------------- wrapper
@jax.jit
def temporal_gnn_forward(adj_seq, x_seq, u_seq, pool, wg, bg, wgate, bgate,
                         prev_h, prev_c, whead, bhead):
    T, N, _ = adj_seq.shape
    F = x_seq.shape[-1]
    G = u_seq.shape[-1]
    B, H = prev_h.shape
    C = whead.shape[-1]
    bf16, f32 = jnp.bfloat16, jnp.float32

    # time-parallel x_t @ W_g hoisted out of the recurrence: one (T*N, F)x(F, H) matmul
    xw_seq = jnp.dot(x_seq.astype(bf16).reshape(T * N, F), wg.astype(bf16),
                     preferred_element_type=f32).reshape(T, N, H).astype(bf16)
    adj_b = adj_seq.astype(bf16)
    pool_b = pool.astype(bf16)
    # split the fused gate weight so the kernel needs no concat (rows: [pooled; u; prev_h])
    wp = wgate[:H].astype(bf16)
    wu = wgate[H:H + G].astype(bf16)
    wh = wgate[H + G:].astype(bf16)
    whead_b = whead.astype(bf16)

    def full(shape):                      # whole-array VMEM block (trivial index_map)
        return pl.BlockSpec(shape, lambda i, _s=shape: (0,) * len(_s))

    return pl.pallas_call(
        temporal_gnn_kernel,
        out_shape=(jax.ShapeDtypeStruct((T, B, C), f32),
                   jax.ShapeDtypeStruct((B, H), f32),
                   jax.ShapeDtypeStruct((B, H), f32)),
        grid=(1,),                        # single invocation; rollout is in-kernel
        in_specs=[
            full((T, N, N)),              # adj_seq (whole sequence VMEM-resident)
            full((T, N, H)),              # xw_seq  = x_seq @ W_g (precomputed, bf16)
            full((T, B, G)),              # u_seq
            full((B, N)),                 # mean-pool matrix
            full((1, H)),                 # b_g
            full((H, 4 * H)),             # W_p (pooled -> gates)
            full((G, 4 * H)),             # W_u (u -> gates)
            full((H, 4 * H)),             # W_h (prev_h -> gates)
            full((1, 4 * H)),             # b_gate
            full((B, H)),                 # prev_h
            full((B, H)),                 # prev_c
            full((H, C)),                 # W_head
            full((1, C)),                 # b_head
        ],
        out_specs=(full((T, B, C)),       # all per-step logits, written once
                   full((B, H)),          # final h
                   full((B, H))),         # final c
        compiler_params=pltpu.CompilerParams(
            dimension_semantics=("arbitrary",)),
    )(adj_b, xw_seq, u_seq, pool_b, bg, wp, wu, wh, bgate,
      prev_h, prev_c, whead_b, bhead)


# ----------------------------------------------------------------------------- glue
def build_norm_adj(edge_index, edge_weight, num_nodes):
    """Dense GCN-style adjacency: D^-1/2 (A + I) D^-1/2 (plain-JAX glue)."""
    src, dst = edge_index[0], edge_index[1]
    adj = jnp.zeros((num_nodes, num_nodes), jnp.float32).at[dst, src].add(edge_weight)
    adj = adj + jnp.eye(num_nodes, dtype=jnp.float32)
    deg = adj.sum(axis=-1)
    dinv = jnp.where(deg > 0, 1.0 / jnp.sqrt(deg), 0.0)
    return dinv[:, None] * adj * dinv[None, :]


def build_pool_matrix(batch, batch_size):
    """(B, N) mean-pool matrix: pool[b, n] = 1/count_b if node n in graph b."""
    one_hot = (batch[None, :] == jnp.arange(batch_size)[:, None]).astype(jnp.float32)
    counts = one_hot.sum(axis=-1, keepdims=True)
    return one_hot / jnp.maximum(counts, 1.0)


def reference_forward(adj_seq, x_seq, u_seq, pool, wg, bg, wgate, bgate,
                      prev_h, prev_c, whead, bhead):
    """Pure-JAX reference mirroring the kernel's bf16-operand / f32-accumulate math."""
    bf16, f32 = jnp.bfloat16, jnp.float32
    T, N, _ = adj_seq.shape
    F = x_seq.shape[-1]
    G = u_seq.shape[-1]
    H = prev_h.shape[-1]
    xw = jnp.dot(x_seq.astype(bf16).reshape(T * N, F), wg.astype(bf16),
                 preferred_element_type=f32).reshape(T, N, H).astype(bf16)
    adj_b, pool_b = adj_seq.astype(bf16), pool.astype(bf16)
    wp, wu, wh = (wgate[:H].astype(bf16), wgate[H:H + G].astype(bf16),
                  wgate[H + G:].astype(bf16))
    whead_b = whead.astype(bf16)
    h, c = prev_h, prev_c
    logits = []
    for t in range(T):
        z = jax.nn.relu(jnp.dot(adj_b[t], xw[t], preferred_element_type=f32) + bg)
        pooled = jnp.dot(pool_b, z.astype(bf16), preferred_element_type=f32)
        gates = (jnp.dot(pooled.astype(bf16), wp, preferred_element_type=f32)
                 + jnp.dot(u_seq[t].astype(bf16), wu, preferred_element_type=f32)
                 + jnp.dot(h.astype(bf16), wh, preferred_element_type=f32)
                 + bgate)
        i_g = jax.nn.sigmoid(gates[:, 0 * H:1 * H])
        f_g = jax.nn.sigmoid(gates[:, 1 * H:2 * H])
        g_g = jnp.tanh(gates[:, 2 * H:3 * H])
        o_g = jax.nn.sigmoid(gates[:, 3 * H:4 * H])
        c = f_g * c + i_g * g_g
        h = o_g * jnp.tanh(c)
        logits.append(jnp.dot(h.astype(bf16), whead_b, preferred_element_type=f32) + bhead)
    return jnp.stack(logits), h, c


# ----------------------------------------------------------------------------- main
if __name__ == "__main__":
    T = 8                               # temporal steps (rolled out inside one kernel body)
    B, NODES_PER_GRAPH = 2, 8           # 2 graphs of 8 nodes each
    N = B * NODES_PER_GRAPH             # 16 nodes total
    F, H, G, C = 16, 32, 8, 4           # node feat, hidden, global feat, classes

    key = jax.random.PRNGKey(0)
    ks = jax.random.split(key, 12)

    # inputs (per-timestep node features / global features)
    x_seq = jax.random.normal(ks[0], (T, N, F), jnp.float32)
    u_seq = jax.random.normal(ks[1], (T, B, G), jnp.float32)
    prev_h = jax.random.normal(ks[2], (B, H), jnp.float32) * 0.1
    prev_c = jax.random.normal(ks[3], (B, H), jnp.float32) * 0.1

    # graph: bidirectional ring inside each graph, per-timestep edge weights
    node_ids = jnp.arange(N)
    graph_of = node_ids // NODES_PER_GRAPH
    nxt = (node_ids % NODES_PER_GRAPH + 1) % NODES_PER_GRAPH + graph_of * NODES_PER_GRAPH
    src = jnp.concatenate([node_ids, nxt])
    dst = jnp.concatenate([nxt, node_ids])
    edge_index = jnp.stack([src, dst])
    edge_weight_seq = jax.random.uniform(ks[4], (T, edge_index.shape[1]), jnp.float32,
                                         0.5, 1.5)
    batch = graph_of.astype(jnp.int32)

    adj_seq = jax.vmap(lambda w: build_norm_adj(edge_index, w, N))(edge_weight_seq)
    pool = build_pool_matrix(batch, B)

    # deterministic parameters (scaled uniform, fan-in based)
    def init(k, shape, fan_in):
        return jax.random.uniform(k, shape, jnp.float32, -1.0, 1.0) / jnp.sqrt(float(fan_in))

    wg = init(ks[5], (F, H), F)
    bg = init(ks[6], (1, H), F)
    # fused LSTM gate weight: rows stacked as [pooled(H); u(G); prev_h(H)],
    # columns ordered [i | f | g | o]  -> shape (2H+G, 4H) = (72, 128)
    wgate = init(ks[7], (2 * H + G, 4 * H), 2 * H + G)
    bgate = init(ks[8], (1, 4 * H), 2 * H + G)
    whead = init(ks[9], (H, C), H)
    bhead = init(ks[10], (1, C), H)

    logits, h, c = temporal_gnn_forward(adj_seq, x_seq, u_seq, pool, wg, bg, wgate, bgate,
                                        prev_h, prev_c, whead, bhead)
    jax.block_until_ready((logits, h, c))

    # correctness check vs pure-JAX reference (same bf16-operand math)
    ref_logits, ref_h, ref_c = reference_forward(adj_seq, x_seq, u_seq, pool, wg, bg,
                                                 wgate, bgate, prev_h, prev_c, whead, bhead)
    assert jnp.allclose(logits, ref_logits, atol=1e-2, rtol=1e-2)
    assert jnp.allclose(h, ref_h, atol=1e-2, rtol=1e-2)
    assert jnp.allclose(c, ref_c, atol=1e-2, rtol=1e-2)

    print("KERNEL_OK")
</pallas_src>

<mosaic_0001>
module attributes {stable_mosaic.version = 11 : i64} {
  func.func @temporal_gnn_kernel(%arg0: i32, %arg1: memref<8x16x16xbf16, #tpu.memory_space<vmem>>, %arg2: memref<8x16x32xbf16, #tpu.memory_space<vmem>>, %arg3: memref<8x2x8xf32, #tpu.memory_space<vmem>>, %arg4: memref<2x16xbf16, #tpu.memory_space<vmem>>, %arg5: memref<1x32xf32, #tpu.memory_space<vmem>>, %arg6: memref<32x128xbf16, #tpu.memory_space<vmem>>, %arg7: memref<8x128xbf16, #tpu.memory_space<vmem>>, %arg8: memref<32x128xbf16, #tpu.memory_space<vmem>>, %arg9: memref<1x128xf32, #tpu.memory_space<vmem>>, %arg10: memref<2x32xf32, #tpu.memory_space<vmem>>, %arg11: memref<2x32xf32, #tpu.memory_space<vmem>>, %arg12: memref<32x4xbf16, #tpu.memory_space<vmem>>, %arg13: memref<1x4xf32, #tpu.memory_space<vmem>>, %arg14: memref<8x2x4xf32, #tpu.memory_space<vmem>>, %arg15: memref<2x32xf32, #tpu.memory_space<vmem>>, %arg16: memref<2x32xf32, #tpu.memory_space<vmem>>) attributes {dimension_semantics = [#tpu.dimension_semantics<arbitrary>], iteration_bounds = array<i64: 1>, scalar_prefetch = 0 : i64, scratch_operands = 0 : i64, tpu.core_type = #tpu.core_type<tc>, window_params = [{pipeline_mode = #tpu.pipeline_mode<synchronous>, transform_indices = @transform_0, window_bounds = array<i64: 8, 16, 16>}, {pipeline_mode = #tpu.pipeline_mode<synchronous>, transform_indices = @transform_1, window_bounds = array<i64: 8, 16, 32>}, {pipeline_mode = #tpu.pipeline_mode<synchronous>, transform_indices = @transform_2, window_bounds = array<i64: 8, 2, 8>}, {pipeline_mode = #tpu.pipeline_mode<synchronous>, transform_indices = @transform_3, window_bounds = array<i64: 2, 16>}, {pipeline_mode = #tpu.pipeline_mode<synchronous>, transform_indices = @transform_4, window_bounds = array<i64: 1, 32>}, {pipeline_mode = #tpu.pipeline_mode<synchronous>, transform_indices = @transform_5, window_bounds = array<i64: 32, 128>}, {pipeline_mode = #tpu.pipeline_mode<synchronous>, transform_indices = @transform_6, window_bounds = array<i64: 8, 128>}, {pipeline_mode = #tpu.pipeline_mode<synchronous>, transform_indices = @transform_7, window_bounds = array<i64: 32, 128>}, {pipeline_mode = #tpu.pipeline_mode<synchronous>, transform_indices = @transform_8, window_bounds = array<i64: 1, 128>}, {pipeline_mode = #tpu.pipeline_mode<synchronous>, transform_indices = @transform_9, window_bounds = array<i64: 2, 32>}, {pipeline_mode = #tpu.pipeline_mode<synchronous>, transform_indices = @transform_10, window_bounds = array<i64: 2, 32>}, {pipeline_mode = #tpu.pipeline_mode<synchronous>, transform_indices = @transform_11, window_bounds = array<i64: 32, 4>}, {pipeline_mode = #tpu.pipeline_mode<synchronous>, transform_indices = @transform_12, window_bounds = array<i64: 1, 4>}, {pipeline_mode = #tpu.pipeline_mode<synchronous>, transform_indices = @transform_13, window_bounds = array<i64: 8, 2, 4>}, {pipeline_mode = #tpu.pipeline_mode<synchronous>, transform_indices = @transform_14, window_bounds = array<i64: 2, 32>}, {pipeline_mode = #tpu.pipeline_mode<synchronous>, transform_indices = @transform_15, window_bounds = array<i64: 2, 32>}]} {
    %c0 = arith.constant 0 : index
    %c0_0 = arith.constant 0 : index
    %0 = vector.load %arg4[%c0, %c0_0] : memref<2x16xbf16, #tpu.memory_space<vmem>>, vector<2x16xbf16>
    %c0_1 = arith.constant 0 : index
    %c0_2 = arith.constant 0 : index
    %1 = vector.load %arg5[%c0_1, %c0_2] : memref<1x32xf32, #tpu.memory_space<vmem>>, vector<1x32xf32>
    %c0_3 = arith.constant 0 : index
    %c0_4 = arith.constant 0 : index
    %2 = vector.load %arg6[%c0_3, %c0_4] : memref<32x128xbf16, #tpu.memory_space<vmem>>, vector<32x128xbf16>
    %c0_5 = arith.constant 0 : index
    %c0_6 = arith.constant 0 : index
    %3 = vector.load %arg7[%c0_5, %c0_6] : memref<8x128xbf16, #tpu.memory_space<vmem>>, vector<8x128xbf16>
    %c0_7 = arith.constant 0 : index
    %c0_8 = arith.constant 0 : index
    %4 = vector.load %arg8[%c0_7, %c0_8] : memref<32x128xbf16, #tpu.memory_space<vmem>>, vector<32x128xbf16>
    %c0_9 = arith.constant 0 : index
    %c0_10 = arith.constant 0 : index
    %5 = vector.load %arg9[%c0_9, %c0_10] : memref<1x128xf32, #tpu.memory_space<vmem>>, vector<1x128xf32>
    %c0_11 = arith.constant 0 : index
    %c0_12 = arith.constant 0 : index
    %6 = vector.load %arg12[%c0_11, %c0_12] : memref<32x4xbf16, #tpu.memory_space<vmem>>, vector<32x4xbf16>
    %c0_13 = arith.constant 0 : index
    %c0_14 = arith.constant 0 : index
    %7 = vector.load %arg13[%c0_13, %c0_14] : memref<1x4xf32, #tpu.memory_space<vmem>>, vector<1x4xf32>
    %c0_15 = arith.constant 0 : index
    %c0_16 = arith.constant 0 : index
    %8 = vector.load %arg10[%c0_15, %c0_16] : memref<2x32xf32, #tpu.memory_space<vmem>>, vector<2x32xf32>
    %c0_17 = arith.constant 0 : index
    %c0_18 = arith.constant 0 : index
    %9 = vector.load %arg11[%c0_17, %c0_18] : memref<2x32xf32, #tpu.memory_space<vmem>>, vector<2x32xf32>
    %c0_i32 = arith.constant 0 : i32
    %10 = arith.index_cast %c0_i32 : i32 to index
    %c0_19 = arith.constant 0 : index
    %c0_20 = arith.constant 0 : index
    %11 = vector.load %arg1[%10, %c0_19, %c0_20] : memref<8x16x16xbf16, #tpu.memory_space<vmem>>, vector<1x16x16xbf16>
    %12 = vector.shape_cast %11 : vector<1x16x16xbf16> to vector<16x16xbf16>
    %13 = arith.index_cast %c0_i32 : i32 to index
    %c0_21 = arith.constant 0 : index
    %c0_22 = arith.constant 0 : index
    %14 = vector.load %arg2[%13, %c0_21, %c0_22] : memref<8x16x32xbf16, #tpu.memory_space<vmem>>, vector<1x16x32xbf16>
    %15 = vector.shape_cast %14 : vector<1x16x32xbf16> to vector<16x32xbf16>
    %cst = arith.constant dense<0.000000e+00> : vector<16x32xf32>
    %16 = tpu.matmul %12, %15, %cst {dimension_numbers = #tpu.dot_dimension_numbers<[1], [0], [0], [1], [0, 0, 1, 1], [], []>} : vector<16x16xbf16>, vector<16x32xbf16>, vector<16x32xf32> -> vector<16x32xf32>
    %17 = vector.broadcast %1 : vector<1x32xf32> to vector<16x32xf32>
    %18 = arith.addf %16, %17 : vector<16x32xf32>
    %cst_23 = arith.constant 0.000000e+00 : f32
    %19 = vector.broadcast %cst_23 : f32 to vector<16x32xf32>
    %20 = arith.maximumf %18, %19 : vector<16x32xf32>
    %21 = arith.truncf %20 : vector<16x32xf32> to vector<16x32xbf16>
    %cst_24 = arith.constant dense<0.000000e+00> : vector<2x32xf32>
    %22 = tpu.matmul %0, %21, %cst_24 {dimension_numbers = #tpu.dot_dimension_numbers<[1], [0], [0], [1], [0, 0, 1, 1], [], []>} : vector<2x16xbf16>, vector<16x32xbf16>, vector<2x32xf32> -> vector<2x32xf32>
    %23 = arith.truncf %22 : vector<2x32xf32> to vector<2x32xbf16>
    %cst_25 = arith.constant dense<0.000000e+00> : vector<2x128xf32>
    %24 = tpu.matmul %23, %2, %cst_25 {dimension_numbers = #tpu.dot_dimension_numbers<[1], [0], [0], [1], [0, 0, 1, 1], [], []>} : vector<2x32xbf16>, vector<32x128xbf16>, vector<2x128xf32> -> vector<2x128xf32>
    %25 = arith.index_cast %c0_i32 : i32 to index
    %c0_26 = arith.constant 0 : index
    %c0_27 = arith.constant 0 : index
    %26 = vector.load %arg3[%25, %c0_26, %c0_27] : memref<8x2x8xf32, #tpu.memory_space<vmem>>, vector<1x2x8xf32>
    %27 = vector.shape_cast %26 : vector<1x2x8xf32> to vector<2x8xf32>
    %28 = arith.truncf %27 : vector<2x8xf32> to vector<2x8xbf16>
    %cst_28 = arith.constant dense<0.000000e+00> : vector<2x128xf32>
    %29 = tpu.matmul %28, %3, %cst_28 {dimension_numbers = #tpu.dot_dimension_numbers<[1], [0], [0], [1], [0, 0, 1, 1], [], []>} : vector<2x8xbf16>, vector<8x128xbf16>, vector<2x128xf32> -> vector<2x128xf32>
    %30 = arith.addf %24, %29 : vector<2x128xf32>
    %31 = arith.truncf %8 : vector<2x32xf32> to vector<2x32xbf16>
    %cst_29 = arith.constant dense<0.000000e+00> : vector<2x128xf32>
    %32 = tpu.matmul %31, %4, %cst_29 {dimension_numbers = #tpu.dot_dimension_numbers<[1], [0], [0], [1], [0, 0, 1, 1], [], []>} : vector<2x32xbf16>, vector<32x128xbf16>, vector<2x128xf32> -> vector<2x128xf32>
    %33 = arith.addf %30, %32 : vector<2x128xf32>
    %34 = vector.broadcast %5 : vector<1x128xf32> to vector<2x128xf32>
    %35 = arith.addf %33, %34 : vector<2x128xf32>
    %36 = vector.extract_strided_slice %35 {offsets = [0, 0], sizes = [2, 32], strides = [1, 1]} : vector<2x128xf32> to vector<2x32xf32>
    %37 = arith.negf %36 : vector<2x32xf32>
    %38 = math.exp %37 : vector<2x32xf32>
    %cst_30 = arith.constant 1.000000e+00 : f32
    %39 = vector.broadcast %cst_30 : f32 to vector<2x32xf32>
    %40 = arith.addf %39, %38 : vector<2x32xf32>
    %41 = arith.divf %39, %40 : vector<2x32xf32>
    %42 = vector.extract_strided_slice %35 {offsets = [0, 32], sizes = [2, 32], strides = [1, 1]} : vector<2x128xf32> to vector<2x32xf32>
    %43 = arith.negf %42 : vector<2x32xf32>
    %44 = math.exp %43 : vector<2x32xf32>
    %cst_31 = arith.constant 1.000000e+00 : f32
    %45 = vector.broadcast %cst_31 : f32 to vector<2x32xf32>
    %46 = arith.addf %45, %44 : vector<2x32xf32>
    %47 = arith.divf %45, %46 : vector<2x32xf32>
    %48 = vector.extract_strided_slice %35 {offsets = [0, 64], sizes = [2, 32], strides = [1, 1]} : vector<2x128xf32> to vector<2x32xf32>
    %49 = math.tanh %48 : vector<2x32xf32>
    %50 = vector.extract_strided_slice %35 {offsets = [0, 96], sizes = [2, 32], strides = [1, 1]} : vector<2x128xf32> to vector<2x32xf32>
    %51 = arith.negf %50 : vector<2x32xf32>
    %52 = math.exp %51 : vector<2x32xf32>
    %cst_32 = arith.constant 1.000000e+00 : f32
    %53 = vector.broadcast %cst_32 : f32 to vector<2x32xf32>
    %54 = arith.addf %53, %52 : vector<2x32xf32>
    %55 = arith.divf %53, %54 : vector<2x32xf32>
    %56 = arith.mulf %47, %9 : vector<2x32xf32>
    %57 = arith.mulf %41, %49 : vector<2x32xf32>
    %58 = arith.addf %56, %57 : vector<2x32xf32>
    %59 = math.tanh %58 : vector<2x32xf32>
    %60 = arith.mulf %55, %59 : vector<2x32xf32>
    %61 = arith.truncf %60 : vector<2x32xf32> to vector<2x32xbf16>
    %cst_33 = arith.constant dense<0.000000e+00> : vector<2x4xf32>
    %62 = tpu.matmul %61, %6, %cst_33 {dimension_numbers = #tpu.dot_dimension_numbers<[1], [0], [0], [1], [0, 0, 1, 1], [], []>} : vector<2x32xbf16>, vector<32x4xbf16>, vector<2x4xf32> -> vector<2x4xf32>
    %63 = vector.broadcast %7 : vector<1x4xf32> to vector<2x4xf32>
    %64 = arith.addf %62, %63 : vector<2x4xf32>
    %65 = arith.index_cast %c0_i32 : i32 to index
    %c0_34 = arith.constant 0 : index
    %c0_35 = arith.constant 0 : index
    %66 = vector.load %arg14[%65, %c0_34, %c0_35] : memref<8x2x4xf32, #tpu.memory_space<vmem>>, vector<1x2x4xf32>
    %67 = vector.shape_cast %66 : vector<1x2x4xf32> to vector<2x4xf32>
    %68 = vector.shape_cast %64 : vector<2x4xf32> to vector<1x2x4xf32>
    tpu.vector_store %arg14[%65, %c0_34, %c0_35], %68 {strides = array<i32>} : memref<8x2x4xf32, #tpu.memory_space<vmem>>, vector<1x2x4xf32>,
    %c1_i32 = arith.constant 1 : i32
    %69 = arith.index_cast %c1_i32 : i32 to index
    %c0_36 = arith.constant 0 : index
    %c0_37 = arith.constant 0 : index
    %70 = vector.load %arg1[%69, %c0_36, %c0_37] : memref<8x16x16xbf16, #tpu.memory_space<vmem>>, vector<1x16x16xbf16>
    %71 = vector.shape_cast %70 : vector<1x16x16xbf16> to vector<16x16xbf16>
    %72 = arith.index_cast %c1_i32 : i32 to index
    %c0_38 = arith.constant 0 : index
    %c0_39 = arith.constant 0 : index
    %73 = vector.load %arg2[%72, %c0_38, %c0_39] : memref<8x16x32xbf16, #tpu.memory_space<vmem>>, vector<1x16x32xbf16>
    %74 = vector.shape_cast %73 : vector<1x16x32xbf16> to vector<16x32xbf16>
    %cst_40 = arith.constant dense<0.000000e+00> : vector<16x32xf32>
    %75 = tpu.matmul %71, %74, %cst_40 {dimension_numbers = #tpu.dot_dimension_numbers<[1], [0], [0], [1], [0, 0, 1, 1], [], []>} : vector<16x16xbf16>, vector<16x32xbf16>, vector<16x32xf32> -> vector<16x32xf32>
    %76 = vector.broadcast %1 : vector<1x32xf32> to vector<16x32xf32>
    %77 = arith.addf %75, %76 : vector<16x32xf32>
    %cst_41 = arith.constant 0.000000e+00 : f32
    %78 = vector.broadcast %cst_41 : f32 to vector<16x32xf32>
    %79 = arith.maximumf %77, %78 : vector<16x32xf32>
    %80 = arith.truncf %79 : vector<16x32xf32> to vector<16x32xbf16>
    %cst_42 = arith.constant dense<0.000000e+00> : vector<2x32xf32>
    %81 = tpu.matmul %0, %80, %cst_42 {dimension_numbers = #tpu.dot_dimension_numbers<[1], [0], [0], [1], [0, 0, 1, 1], [], []>} : vector<2x16xbf16>, vector<16x32xbf16>, vector<2x32xf32> -> vector<2x32xf32>
    %82 = arith.truncf %81 : vector<2x32xf32> to vector<2x32xbf16>
    %cst_43 = arith.constant dense<0.000000e+00> : vector<2x128xf32>
    %83 = tpu.matmul %82, %2, %cst_43 {dimension_numbers = #tpu.dot_dimension_numbers<[1], [0], [0], [1], [0, 0, 1, 1], [], []>} : vector<2x32xbf16>, vector<32x128xbf16>, vector<2x128xf32> -> vector<2x128xf32>
    %84 = arith.index_cast %c1_i32 : i32 to index
    %c0_44 = arith.constant 0 : index
    %c0_45 = arith.constant 0 : index
    %85 = vector.load %arg3[%84, %c0_44, %c0_45] : memref<8x2x8xf32, #tpu.memory_space<vmem>>, vector<1x2x8xf32>
    %86 = vector.shape_cast %85 : vector<1x2x8xf32> to vector<2x8xf32>
    %87 = arith.truncf %86 : vector<2x8xf32> to vector<2x8xbf16>
    %cst_46 = arith.constant dense<0.000000e+00> : vector<2x128xf32>
    %88 = tpu.matmul %87, %3, %cst_46 {dimension_numbers = #tpu.dot_dimension_numbers<[1], [0], [0], [1], [0, 0, 1, 1], [], []>} : vector<2x8xbf16>, vector<8x128xbf16>, vector<2x128xf32> -> vector<2x128xf32>
    %89 = arith.addf %83, %88 : vector<2x128xf32>
    %90 = arith.truncf %60 : vector<2x32xf32> to vector<2x32xbf16>
    %cst_47 = arith.constant dense<0.000000e+00> : vector<2x128xf32>
    %91 = tpu.matmul %90, %4, %cst_47 {dimension_numbers = #tpu.dot_dimension_numbers<[1], [0], [0], [1], [0, 0, 1, 1], [], []>} : vector<2x32xbf16>, vector<32x128xbf16>, vector<2x128xf32> -> vector<2x128xf32>
    %92 = arith.addf %89, %91 : vector<2x128xf32>
    %93 = vector.broadcast %5 : vector<1x128xf32> to vector<2x128xf32>
    %94 = arith.addf %92, %93 : vector<2x128xf32>
    %95 = vector.extract_strided_slice %94 {offsets = [0, 0], sizes = [2, 32], strides = [1, 1]} : vector<2x128xf32> to vector<2x32xf32>
    %96 = arith.negf %95 : vector<2x32xf32>
    %97 = math.exp %96 : vector<2x32xf32>
    %cst_48 = arith.constant 1.000000e+00 : f32
    %98 = vector.broadcast %cst_48 : f32 to vector<2x32xf32>
    %99 = arith.addf %98, %97 : vector<2x32xf32>
    %100 = arith.divf %98, %99 : vector<2x32xf32>
    %101 = vector.extract_strided_slice %94 {offsets = [0, 32], sizes = [2, 32], strides = [1, 1]} : vector<2x128xf32> to vector<2x32xf32>
    %102 = arith.negf %101 : vector<2x32xf32>
    %103 = math.exp %102 : vector<2x32xf32>
    %cst_49 = arith.constant 1.000000e+00 : f32
    %104 = vector.broadcast %cst_49 : f32 to vector<2x32xf32>
    %105 = arith.addf %104, %103 : vector<2x32xf32>
    %106 = arith.divf %104, %105 : vector<2x32xf32>
    %107 = vector.extract_strided_slice %94 {offsets = [0, 64], sizes = [2, 32], strides = [1, 1]} : vector<2x128xf32> to vector<2x32xf32>
    %108 = math.tanh %107 : vector<2x32xf32>
    %109 = vector.extract_strided_slice %94 {offsets = [0, 96], sizes = [2, 32], strides = [1, 1]} : vector<2x128xf32> to vector<2x32xf32>
    %110 = arith.negf %109 : vector<2x32xf32>
    %111 = math.exp %110 : vector<2x32xf32>
    %cst_50 = arith.constant 1.000000e+00 : f32
    %112 = vector.broadcast %cst_50 : f32 to vector<2x32xf32>
    %113 = arith.addf %112, %111 : vector<2x32xf32>
    %114 = arith.divf %112, %113 : vector<2x32xf32>
    %115 = arith.mulf %106, %58 : vector<2x32xf32>
    %116 = arith.mulf %100, %108 : vector<2x32xf32>
    %117 = arith.addf %115, %116 : vector<2x32xf32>
    %118 = math.tanh %117 : vector<2x32xf32>
    %119 = arith.mulf %114, %118 : vector<2x32xf32>
    %120 = arith.truncf %119 : vector<2x32xf32> to vector<2x32xbf16>
    %cst_51 = arith.constant dense<0.000000e+00> : vector<2x4xf32>
    %121 = tpu.matmul %120, %6, %cst_51 {dimension_numbers = #tpu.dot_dimension_numbers<[1], [0], [0], [1], [0, 0, 1, 1], [], []>} : vector<2x32xbf16>, vector<32x4xbf16>, vector<2x4xf32> -> vector<2x4xf32>
    %122 = vector.broadcast %7 : vector<1x4xf32> to vector<2x4xf32>
    %123 = arith.addf %121, %122 : vector<2x4xf32>
    %124 = arith.index_cast %c1_i32 : i32 to index
    %c0_52 = arith.constant 0 : index
    %c0_53 = arith.constant 0 : index
    %125 = vector.load %arg14[%124, %c0_52, %c0_53] : memref<8x2x4xf32, #tpu.memory_space<vmem>>, vector<1x2x4xf32>
    %126 = vector.shape_cast %125 : vector<1x2x4xf32> to vector<2x4xf32>
    %127 = vector.shape_cast %123 : vector<2x4xf32> to vector<1x2x4xf32>
    tpu.vector_store %arg14[%124, %c0_52, %c0_53], %127 {strides = array<i32>} : memref<8x2x4xf32, #tpu.memory_space<vmem>>, vector<1x2x4xf32>,
    %c2_i32 = arith.constant 2 : i32
    %128 = arith.index_cast %c2_i32 : i32 to index
    %c0_54 = arith.constant 0 : index
    %c0_55 = arith.constant 0 : index
    %129 = vector.load %arg1[%128, %c0_54, %c0_55] : memref<8x16x16xbf16, #tpu.memory_space<vmem>>, vector<1x16x16xbf16>
    %130 = vector.shape_cast %129 : vector<1x16x16xbf16> to vector<16x16xbf16>
    %131 = arith.index_cast %c2_i32 : i32 to index
    %c0_56 = arith.constant 0 : index
    %c0_57 = arith.constant 0 : index
    %132 = vector.load %arg2[%131, %c0_56, %c0_57] : memref<8x16x32xbf16, #tpu.memory_space<vmem>>, vector<1x16x32xbf16>
    %133 = vector.shape_cast %132 : vector<1x16x32xbf16> to vector<16x32xbf16>
    %cst_58 = arith.constant dense<0.000000e+00> : vector<16x32xf32>
    %134 = tpu.matmul %130, %133, %cst_58 {dimension_numbers = #tpu.dot_dimension_numbers<[1], [0], [0], [1], [0, 0, 1, 1], [], []>} : vector<16x16xbf16>, vector<16x32xbf16>, vector<16x32xf32> -> vector<16x32xf32>
    %135 = vector.broadcast %1 : vector<1x32xf32> to vector<16x32xf32>
    %136 = arith.addf %134, %135 : vector<16x32xf32>
    %cst_59 = arith.constant 0.000000e+00 : f32
    %137 = vector.broadcast %cst_59 : f32 to vector<16x32xf32>
    %138 = arith.maximumf %136, %137 : vector<16x32xf32>
    %139 = arith.truncf %138 : vector<16x32xf32> to vector<16x32xbf16>
    %cst_60 = arith.constant dense<0.000000e+00> : vector<2x32xf32>
    %140 = tpu.matmul %0, %139, %cst_60 {dimension_numbers = #tpu.dot_dimension_numbers<[1], [0], [0], [1], [0, 0, 1, 1], [], []>} : vector<2x16xbf16>, vector<16x32xbf16>, vector<2x32xf32> -> vector<2x32xf32>
    %141 = arith.truncf %140 : vector<2x32xf32> to vector<2x32xbf16>
    %cst_61 = arith.constant dense<0.000000e+00> : vector<2x128xf32>
    %142 = tpu.matmul %141, %2, %cst_61 {dimension_numbers = #tpu.dot_dimension_numbers<[1], [0], [0], [1], [0, 0, 1, 1], [], []>} : vector<2x32xbf16>, vector<32x128xbf16>, vector<2x128xf32> -> vector<2x128xf32>
    %143 = arith.index_cast %c2_i32 : i32 to index
    %c0_62 = arith.constant 0 : index
    %c0_63 = arith.constant 0 : index
    %144 = vector.load %arg3[%143, %c0_62, %c0_63] : memref<8x2x8xf32, #tpu.memory_space<vmem>>, vector<1x2x8xf32>
    %145 = vector.shape_cast %144 : vector<1x2x8xf32> to vector<2x8xf32>
    %146 = arith.truncf %145 : vector<2x8xf32> to vector<2x8xbf16>
    %cst_64 = arith.constant dense<0.000000e+00> : vector<2x128xf32>
    %147 = tpu.matmul %146, %3, %cst_64 {dimension_numbers = #tpu.dot_dimension_numbers<[1], [0], [0], [1], [0, 0, 1, 1], [], []>} : vector<2x8xbf16>, vector<8x128xbf16>, vector<2x128xf32> -> vector<2x128xf32>
    %148 = arith.addf %142, %147 : vector<2x128xf32>
    %149 = arith.truncf %119 : vector<2x32xf32> to vector<2x32xbf16>
    %cst_65 = arith.constant dense<0.000000e+00> : vector<2x128xf32>
    %150 = tpu.matmul %149, %4, %cst_65 {dimension_numbers = #tpu.dot_dimension_numbers<[1], [0], [0], [1], [0, 0, 1, 1], [], []>} : vector<2x32xbf16>, vector<32x128xbf16>, vector<2x128xf32> -> vector<2x128xf32>
    %151 = arith.addf %148, %150 : vector<2x128xf32>
    %152 = vector.broadcast %5 : vector<1x128xf32> to vector<2x128xf32>
    %153 = arith.addf %151, %152 : vector<2x128xf32>
    %154 = vector.extract_strided_slice %153 {offsets = [0, 0], sizes = [2, 32], strides = [1, 1]} : vector<2x128xf32> to vector<2x32xf32>
    %155 = arith.negf %154 : vector<2x32xf32>
    %156 = math.exp %155 : vector<2x32xf32>
    %cst_66 = arith.constant 1.000000e+00 : f32
    %157 = vector.broadcast %cst_66 : f32 to vector<2x32xf32>
    %158 = arith.addf %157, %156 : vector<2x32xf32>
    %159 = arith.divf %157, %158 : vector<2x32xf32>
    %160 = vector.extract_strided_slice %153 {offsets = [0, 32], sizes = [2, 32], strides = [1, 1]} : vector<2x128xf32> to vector<2x32xf32>
    %161 = arith.negf %160 : vector<2x32xf32>
    %162 = math.exp %161 : vector<2x32xf32>
    %cst_67 = arith.constant 1.000000e+00 : f32
    %163 = vector.broadcast %cst_67 : f32 to vector<2x32xf32>
    %164 = arith.addf %163, %162 : vector<2x32xf32>
    %165 = arith.divf %163, %164 : vector<2x32xf32>
    %166 = vector.extract_strided_slice %153 {offsets = [0, 64], sizes = [2, 32], strides = [1, 1]} : vector<2x128xf32> to vector<2x32xf32>
    %167 = math.tanh %166 : vector<2x32xf32>
    %168 = vector.extract_strided_slice %153 {offsets = [0, 96], sizes = [2, 32], strides = [1, 1]} : vector<2x128xf32> to vector<2x32xf32>
    %169 = arith.negf %168 : vector<2x32xf32>
    %170 = math.exp %169 : vector<2x32xf32>
    %cst_68 = arith.constant 1.000000e+00 : f32
    %171 = vector.broadcast %cst_68 : f32 to vector<2x32xf32>
    %172 = arith.addf %171, %170 : vector<2x32xf32>
    %173 = arith.divf %171, %172 : vector<2x32xf32>
    %174 = arith.mulf %165, %117 : vector<2x32xf32>
    %175 = arith.mulf %159, %167 : vector<2x32xf32>
    %176 = arith.addf %174, %175 : vector<2x32xf32>
    %177 = math.tanh %176 : vector<2x32xf32>
    %178 = arith.mulf %173, %177 : vector<2x32xf32>
    %179 = arith.truncf %178 : vector<2x32xf32> to vector<2x32xbf16>
    %cst_69 = arith.constant dense<0.000000e+00> : vector<2x4xf32>
    %180 = tpu.matmul %179, %6, %cst_69 {dimension_numbers = #tpu.dot_dimension_numbers<[1], [0], [0], [1], [0, 0, 1, 1], [], []>} : vector<2x32xbf16>, vector<32x4xbf16>, vector<2x4xf32> -> vector<2x4xf32>
    %181 = vector.broadcast %7 : vector<1x4xf32> to vector<2x4xf32>
    %182 = arith.addf %180, %181 : vector<2x4xf32>
    %183 = arith.index_cast %c2_i32 : i32 to index
    %c0_70 = arith.constant 0 : index
    %c0_71 = arith.constant 0 : index
    %184 = vector.load %arg14[%183, %c0_70, %c0_71] : memref<8x2x4xf32, #tpu.memory_space<vmem>>, vector<1x2x4xf32>
    %185 = vector.shape_cast %184 : vector<1x2x4xf32> to vector<2x4xf32>
    %186 = vector.shape_cast %182 : vector<2x4xf32> to vector<1x2x4xf32>
    tpu.vector_store %arg14[%183, %c0_70, %c0_71], %186 {strides = array<i32>} : memref<8x2x4xf32, #tpu.memory_space<vmem>>, vector<1x2x4xf32>,
    %c3_i32 = arith.constant 3 : i32
    %187 = arith.index_cast %c3_i32 : i32 to index
    %c0_72 = arith.constant 0 : index
    %c0_73 = arith.constant 0 : index
    %188 = vector.load %arg1[%187, %c0_72, %c0_73] : memref<8x16x16xbf16, #tpu.memory_space<vmem>>, vector<1x16x16xbf16>
    %189 = vector.shape_cast %188 : vector<1x16x16xbf16> to vector<16x16xbf16>
    %190 = arith.index_cast %c3_i32 : i32 to index
    %c0_74 = arith.constant 0 : index
    %c0_75 = arith.constant 0 : index
    %191 = vector.load %arg2[%190, %c0_74, %c0_75] : memref<8x16x32xbf16, #tpu.memory_space<vmem>>, vector<1x16x32xbf16>
    %192 = vector.shape_cast %191 : vector<1x16x32xbf16> to vector<16x32xbf16>
    %cst_76 = arith.constant dense<0.000000e+00> : vector<16x32xf32>
    %193 = tpu.matmul %189, %192, %cst_76 {dimension_numbers = #tpu.dot_dimension_numbers<[1], [0], [0], [1], [0, 0, 1, 1], [], []>} : vector<16x16xbf16>, vector<16x32xbf16>, vector<16x32xf32> -> vector<16x32xf32>
    %194 = vector.broadcast %1 : vector<1x32xf32> to vector<16x32xf32>
    %195 = arith.addf %193, %194 : vector<16x32xf32>
    %cst_77 = arith.constant 0.000000e+00 : f32
    %196 = vector.broadcast %cst_77 : f32 to vector<16x32xf32>
    %197 = arith.maximumf %195, %196 : vector<16x32xf32>
    %198 = arith.truncf %197 : vector<16x32xf32> to vector<16x32xbf16>
    %cst_78 = arith.constant dense<0.000000e+00> : vector<2x32xf32>
    %199 = tpu.matmul %0, %198, %cst_78 {dimension_numbers = #tpu.dot_dimension_numbers<[1], [0], [0], [1], [0, 0, 1, 1], [], []>} : vector<2x16xbf16>, vector<16x32xbf16>, vector<2x32xf32> -> vector<2x32xf32>
    %200 = arith.truncf %199 : vector<2x32xf32> to vector<2x32xbf16>
    %cst_79 = arith.constant dense<0.000000e+00> : vector<2x128xf32>
    %201 = tpu.matmul %200, %2, %cst_79 {dimension_numbers = #tpu.dot_dimension_numbers<[1], [0], [0], [1], [0, 0, 1, 1], [], []>} : vector<2x32xbf16>, vector<32x128xbf16>, vector<2x128xf32> -> vector<2x128xf32>
    %202 = arith.index_cast %c3_i32 : i32 to index
    %c0_80 = arith.constant 0 : index
    %c0_81 = arith.constant 0 : index
    %203 = vector.load %arg3[%202, %c0_80, %c0_81] : memref<8x2x8xf32, #tpu.memory_space<vmem>>, vector<1x2x8xf32>
    %204 = vector.shape_cast %203 : vector<1x2x8xf32> to vector<2x8xf32>
    %205 = arith.truncf %204 : vector<2x8xf32> to vector<2x8xbf16>
    %cst_82 = arith.constant dense<0.000000e+00> : vector<2x128xf32>
    %206 = tpu.matmul %205, %3, %cst_82 {dimension_numbers = #tpu.dot_dimension_numbers<[1], [0], [0], [1], [0, 0, 1, 1], [], []>} : vector<2x8xbf16>, vector<8x128xbf16>, vector<2x128xf32> -> vector<2x128xf32>
    %207 = arith.addf %201, %206 : vector<2x128xf32>
    %208 = arith.truncf %178 : vector<2x32xf32> to vector<2x32xbf16>
    %cst_83 = arith.constant dense<0.000000e+00> : vector<2x128xf32>
    %209 = tpu.matmul %208, %4, %cst_83 {dimension_numbers = #tpu.dot_dimension_numbers<[1], [0], [0], [1], [0, 0, 1, 1], [], []>} : vector<2x32xbf16>, vector<32x128xbf16>, vector<2x128xf32> -> vector<2x128xf32>
    %210 = arith.addf %207, %209 : vector<2x128xf32>
    %211 = vector.broadcast %5 : vector<1x128xf32> to vector<2x128xf32>
    %212 = arith.addf %210, %211 : vector<2x128xf32>
    %213 = vector.extract_strided_slice %212 {offsets = [0, 0], sizes = [2, 32], strides = [1, 1]} : vector<2x128xf32> to vector<2x32xf32>
    %214 = arith.negf %213 : vector<2x32xf32>
    %215 = math.exp %214 : vector<2x32xf32>
    %cst_84 = arith.constant 1.000000e+00 : f32
    %216 = vector.broadcast %cst_84 : f32 to vector<2x32xf32>
    %217 = arith.addf %216, %215 : vector<2x32xf32>
    %218 = arith.divf %216, %217 : vector<2x32xf32>
    %219 = vector.extract_strided_slice %212 {offsets = [0, 32], sizes = [2, 32], strides = [1, 1]} : vector<2x128xf32> to vector<2x32xf32>
    %220 = arith.negf %219 : vector<2x32xf32>
    %221 = math.exp %220 : vector<2x32xf32>
    %cst_85 = arith.constant 1.000000e+00 : f32
    %222 = vector.broadcast %cst_85 : f32 to vector<2x32xf32>
    %223 = arith.addf %222, %221 : vector<2x32xf32>
    %224 = arith.divf %222, %223 : vector<2x32xf32>
    %225 = vector.extract_strided_slice %212 {offsets = [0, 64], sizes = [2, 32], strides = [1, 1]} : vector<2x128xf32> to vector<2x32xf32>
    %226 = math.tanh %225 : vector<2x32xf32>
    %227 = vector.extract_strided_slice %212 {offsets = [0, 96], sizes = [2, 32], strides = [1, 1]} : vector<2x128xf32> to vector<2x32xf32>
    %228 = arith.negf %227 : vector<2x32xf32>
    %229 = math.exp %228 : vector<2x32xf32>
    %cst_86 = arith.constant 1.000000e+00 : f32
    %230 = vector.broadcast %cst_86 : f32 to vector<2x32xf32>
    %231 = arith.addf %230, %229 : vector<2x32xf32>
    %232 = arith.divf %230, %231 : vector<2x32xf32>
    %233 = arith.mulf %224, %176 : vector<2x32xf32>
    %234 = arith.mulf %218, %226 : vector<2x32xf32>
    %235 = arith.addf %233, %234 : vector<2x32xf32>
    %236 = math.tanh %235 : vector<2x32xf32>
    %237 = arith.mulf %232, %236 : vector<2x32xf32>
    %238 = arith.truncf %237 : vector<2x32xf32> to vector<2x32xbf16>
    %cst_87 = arith.constant dense<0.000000e+00> : vector<2x4xf32>
    %239 = tpu.matmul %238, %6, %cst_87 {dimension_numbers = #tpu.dot_dimension_numbers<[1], [0], [0], [1], [0, 0, 1, 1], [], []>} : vector<2x32xbf16>, vector<32x4xbf16>, vector<2x4xf32> -> vector<2x4xf32>
    %240 = vector.broadcast %7 : vector<1x4xf32> to vector<2x4xf32>
    %241 = arith.addf %239, %240 : vector<2x4xf32>
    %242 = arith.index_cast %c3_i32 : i32 to index
    %c0_88 = arith.constant 0 : index
    %c0_89 = arith.constant 0 : index
    %243 = vector.load %arg14[%242, %c0_88, %c0_89] : memref<8x2x4xf32, #tpu.memory_space<vmem>>, vector<1x2x4xf32>
    %244 = vector.shape_cast %243 : vector<1x2x4xf32> to vector<2x4xf32>
    %245 = vector.shape_cast %241 : vector<2x4xf32> to vector<1x2x4xf32>
    tpu.vector_store %arg14[%242, %c0_88, %c0_89], %245 {strides = array<i32>} : memref<8x2x4xf32, #tpu.memory_space<vmem>>, vector<1x2x4xf32>,
    %c4_i32 = arith.constant 4 : i32
    %246 = arith.index_cast %c4_i32 : i32 to index
    %c0_90 = arith.constant 0 : index
    %c0_91 = arith.constant 0 : index
    %247 = vector.load %arg1[%246, %c0_90, %c0_91] : memref<8x16x16xbf16, #tpu.memory_space<vmem>>, vector<1x16x16xbf16>
    %248 = vector.shape_cast %247 : vector<1x16x16xbf16> to vector<16x16xbf16>
    %249 = arith.index_cast %c4_i32 : i32 to index
    %c0_92 = arith.constant 0 : index
    %c0_93 = arith.constant 0 : index
    %250 = vector.load %arg2[%249, %c0_92, %c0_93] : memref<8x16x32xbf16, #tpu.memory_space<vmem>>, vector<1x16x32xbf16>
    %251 = vector.shape_cast %250 : vector<1x16x32xbf16> to vector<16x32xbf16>
    %cst_94 = arith.constant dense<0.000000e+00> : vector<16x32xf32>
    %252 = tpu.matmul %248, %251, %cst_94 {dimension_numbers = #tpu.dot_dimension_numbers<[1], [0], [0], [1], [0, 0, 1, 1], [], []>} : vector<16x16xbf16>, vector<16x32xbf16>, vector<16x32xf32> -> vector<16x32xf32>
    %253 = vector.broadcast %1 : vector<1x32xf32> to vector<16x32xf32>
    %254 = arith.addf %252, %253 : vector<16x32xf32>
    %cst_95 = arith.constant 0.000000e+00 : f32
    %255 = vector.broadcast %cst_95 : f32 to vector<16x32xf32>
    %256 = arith.maximumf %254, %255 : vector<16x32xf32>
    %257 = arith.truncf %256 : vector<16x32xf32> to vector<16x32xbf16>
    %cst_96 = arith.constant dense<0.000000e+00> : vector<2x32xf32>
    %258 = tpu.matmul %0, %257, %cst_96 {dimension_numbers = #tpu.dot_dimension_numbers<[1], [0], [0], [1], [0, 0, 1, 1], [], []>} : vector<2x16xbf16>, vector<16x32xbf16>, vector<2x32xf32> -> vector<2x32xf32>
    %259 = arith.truncf %258 : vector<2x32xf32> to vector<2x32xbf16>
    %cst_97 = arith.constant dense<0.000000e+00> : vector<2x128xf32>
    %260 = tpu.matmul %259, %2, %cst_97 {dimension_numbers = #tpu.dot_dimension_numbers<[1], [0], [0], [1], [0, 0, 1, 1], [], []>} : vector<2x32xbf16>, vector<32x128xbf16>, vector<2x128xf32> -> vector<2x128xf32>
    %261 = arith.index_cast %c4_i32 : i32 to index
    %c0_98 = arith.constant 0 : index
    %c0_99 = arith.constant 0 : index
    %262 = vector.load %arg3[%261, %c0_98, %c0_99] : memref<8x2x8xf32, #tpu.memory_space<vmem>>, vector<1x2x8xf32>
    %263 = vector.shape_cast %262 : vector<1x2x8xf32> to vector<2x8xf32>
    %264 = arith.truncf %263 : vector<2x8xf32> to vector<2x8xbf16>
    %cst_100 = arith.constant dense<0.000000e+00> : vector<2x128xf32>
    %265 = tpu.matmul %264, %3, %cst_100 {dimension_numbers = #tpu.dot_dimension_numbers<[1], [0], [0], [1], [0, 0, 1, 1], [], []>} : vector<2x8xbf16>, vector<8x128xbf16>, vector<2x128xf32> -> vector<2x128xf32>
    %266 = arith.addf %260, %265 : vector<2x128xf32>
    %267 = arith.truncf %237 : vector<2x32xf32> to vector<2x32xbf16>
    %cst_101 = arith.constant dense<0.000000e+00> : vector<2x128xf32>
    %268 = tpu.matmul %267, %4, %cst_101 {dimension_numbers = #tpu.dot_dimension_numbers<[1], [0], [0], [1], [0, 0, 1, 1], [], []>} : vector<2x32xbf16>, vector<32x128xbf16>, vector<2x128xf32> -> vector<2x128xf32>
    %269 = arith.addf %266, %268 : vector<2x128xf32>
    %270 = vector.broadcast %5 : vector<1x128xf32> to vector<2x128xf32>
    %271 = arith.addf %269, %270 : vector<2x128xf32>
    %272 = vector.extract_strided_slice %271 {offsets = [0, 0], sizes = [2, 32], strides = [1, 1]} : vector<2x128xf32> to vector<2x32xf32>
    %273 = arith.negf %272 : vector<2x32xf32>
    %274 = math.exp %273 : vector<2x32xf32>
    %cst_102 = arith.constant 1.000000e+00 : f32
    %275 = vector.broadcast %cst_102 : f32 to vector<2x32xf32>
    %276 = arith.addf %275, %274 : vector<2x32xf32>
    %277 = arith.divf %275, %276 : vector<2x32xf32>
    %278 = vector.extract_strided_slice %271 {offsets = [0, 32], sizes = [2, 32], strides = [1, 1]} : vector<2x128xf32> to vector<2x32xf32>
    %279 = arith.negf %278 : vector<2x32xf32>
    %280 = math.exp %279 : vector<2x32xf32>
    %cst_103 = arith.constant 1.000000e+00 : f32
    %281 = vector.broadcast %cst_103 : f32 to vector<2x32xf32>
    %282 = arith.addf %281, %280 : vector<2x32xf32>
    %283 = arith.divf %281, %282 : vector<2x32xf32>
    %284 = vector.extract_strided_slice %271 {offsets = [0, 64], sizes = [2, 32], strides = [1, 1]} : vector<2x128xf32> to vector<2x32xf32>
    %285 = math.tanh %284 : vector<2x32xf32>
    %286 = vector.extract_strided_slice %271 {offsets = [0, 96], sizes = [2, 32], strides = [1, 1]} : vector<2x128xf32> to vector<2x32xf32>
    %287 = arith.negf %286 : vector<2x32xf32>
    %288 = math.exp %287 : vector<2x32xf32>
    %cst_104 = arith.constant 1.000000e+00 : f32
    %289 = vector.broadcast %cst_104 : f32 to vector<2x32xf32>
    %290 = arith.addf %289, %288 : vector<2x32xf32>
    %291 = arith.divf %289, %290 : vector<2x32xf32>
    %292 = arith.mulf %283, %235 : vector<2x32xf32>
    %293 = arith.mulf %277, %285 : vector<2x32xf32>
    %294 = arith.addf %292, %293 : vector<2x32xf32>
    %295 = math.tanh %294 : vector<2x32xf32>
    %296 = arith.mulf %291, %295 : vector<2x32xf32>
    %297 = arith.truncf %296 : vector<2x32xf32> to vector<2x32xbf16>
    %cst_105 = arith.constant dense<0.000000e+00> : vector<2x4xf32>
    %298 = tpu.matmul %297, %6, %cst_105 {dimension_numbers = #tpu.dot_dimension_numbers<[1], [0], [0], [1], [0, 0, 1, 1], [], []>} : vector<2x32xbf16>, vector<32x4xbf16>, vector<2x4xf32> -> vector<2x4xf32>
    %299 = vector.broadcast %7 : vector<1x4xf32> to vector<2x4xf32>
    %300 = arith.addf %298, %299 : vector<2x4xf32>
    %301 = arith.index_cast %c4_i32 : i32 to index
    %c0_106 = arith.constant 0 : index
    %c0_107 = arith.constant 0 : index
    %302 = vector.load %arg14[%301, %c0_106, %c0_107] : memref<8x2x4xf32, #tpu.memory_space<vmem>>, vector<1x2x4xf32>
    %303 = vector.shape_cast %302 : vector<1x2x4xf32> to vector<2x4xf32>
    %304 = vector.shape_cast %300 : vector<2x4xf32> to vector<1x2x4xf32>
    tpu.vector_store %arg14[%301, %c0_106, %c0_107], %304 {strides = array<i32>} : memref<8x2x4xf32, #tpu.memory_space<vmem>>, vector<1x2x4xf32>,
    %c5_i32 = arith.constant 5 : i32
    %305 = arith.index_cast %c5_i32 : i32 to index
    %c0_108 = arith.constant 0 : index
    %c0_109 = arith.constant 0 : index
    %306 = vector.load %arg1[%305, %c0_108, %c0_109] : memref<8x16x16xbf16, #tpu.memory_space<vmem>>, vector<1x16x16xbf16>
    %307 = vector.shape_cast %306 : vector<1x16x16xbf16> to vector<16x16xbf16>
    %308 = arith.index_cast %c5_i32 : i32 to index
    %c0_110 = arith.constant 0 : index
    %c0_111 = arith.constant 0 : index
    %309 = vector.load %arg2[%308, %c0_110, %c0_111] : memref<8x16x32xbf16, #tpu.memory_space<vmem>>, vector<1x16x32xbf16>
    %310 = vector.shape_cast %309 : vector<1x16x32xbf16> to vector<16x32xbf16>
    %cst_112 = arith.constant dense<0.000000e+00> : vector<16x32xf32>
    %311 = tpu.matmul %307, %310, %cst_112 {dimension_numbers = #tpu.dot_dimension_numbers<[1], [0], [0], [1], [0, 0, 1, 1], [], []>} : vector<16x16xbf16>, vector<16x32xbf16>, vector<16x32xf32> -> vector<16x32xf32>
    %312 = vector.broadcast %1 : vector<1x32xf32> to vector<16x32xf32>
    %313 = arith.addf %311, %312 : vector<16x32xf32>
    %cst_113 = arith.constant 0.000000e+00 : f32
    %314 = vector.broadcast %cst_113 : f32 to vector<16x32xf32>
    %315 = arith.maximumf %313, %314 : vector<16x32xf32>
    %316 = arith.truncf %315 : vector<16x32xf32> to vector<16x32xbf16>
    %cst_114 = arith.constant dense<0.000000e+00> : vector<2x32xf32>
    %317 = tpu.matmul %0, %316, %cst_114 {dimension_numbers = #tpu.dot_dimension_numbers<[1], [0], [0], [1], [0, 0, 1, 1], [], []>} : vector<2x16xbf16>, vector<16x32xbf16>, vector<2x32xf32> -> vector<2x32xf32>
    %318 = arith.truncf %317 : vector<2x32xf32> to vector<2x32xbf16>
    %cst_115 = arith.constant dense<0.000000e+00> : vector<2x128xf32>
    %319 = tpu.matmul %318, %2, %cst_115 {dimension_numbers = #tpu.dot_dimension_numbers<[1], [0], [0], [1], [0, 0, 1, 1], [], []>} : vector<2x32xbf16>, vector<32x128xbf16>, vector<2x128xf32> -> vector<2x128xf32>
    %320 = arith.index_cast %c5_i32 : i32 to index
    %c0_116 = arith.constant 0 : index
    %c0_117 = arith.constant 0 : index
    %321 = vector.load %arg3[%320, %c0_116, %c0_117] : memref<8x2x8xf32, #tpu.memory_space<vmem>>, vector<1x2x8xf32>
    %322 = vector.shape_cast %321 : vector<1x2x8xf32> to vector<2x8xf32>
    %323 = arith.truncf %322 : vector<2x8xf32> to vector<2x8xbf16>
    %cst_118 = arith.constant dense<0.000000e+00> : vector<2x128xf32>
    %324 = tpu.matmul %323, %3, %cst_118 {dimension_numbers = #tpu.dot_dimension_numbers<[1], [0], [0], [1], [0, 0, 1, 1], [], []>} : vector<2x8xbf16>, vector<8x128xbf16>, vector<2x128xf32> -> vector<2x128xf32>
    %325 = arith.addf %319, %324 : vector<2x128xf32>
    %326 = arith.truncf %296 : vector<2x32xf32> to vector<2x32xbf16>
    %cst_119 = arith.constant dense<0.000000e+00> : vector<2x128xf32>
    %327 = tpu.matmul %326, %4, %cst_119 {dimension_numbers = #tpu.dot_dimension_numbers<[1], [0], [0], [1], [0, 0, 1, 1], [], []>} : vector<2x32xbf16>, vector<32x128xbf16>, vector<2x128xf32> -> vector<2x128xf32>
    %328 = arith.addf %325, %327 : vector<2x128xf32>
    %329 = vector.broadcast %5 : vector<1x128xf32> to vector<2x128xf32>
    %330 = arith.addf %328, %329 : vector<2x128xf32>
    %331 = vector.extract_strided_slice %330 {offsets = [0, 0], sizes = [2, 32], strides = [1, 1]} : vector<2x128xf32> to vector<2x32xf32>
    %332 = arith.negf %331 : vector<2x32xf32>
    %333 = math.exp %332 : vector<2x32xf32>
    %cst_120 = arith.constant 1.000000e+00 : f32
    %334 = vector.broadcast %cst_120 : f32 to vector<2x32xf32>
    %335 = arith.addf %334, %333 : vector<2x32xf32>
    %336 = arith.divf %334, %335 : vector<2x32xf32>
    %337 = vector.extract_strided_slice %330 {offsets = [0, 32], sizes = [2, 32], strides = [1, 1]} : vector<2x128xf32> to vector<2x32xf32>
    %338 = arith.negf %337 : vector<2x32xf32>
    %339 = math.exp %338 : vector<2x32xf32>
    %cst_121 = arith.constant 1.000000e+00 : f32
    %340 = vector.broadcast %cst_121 : f32 to vector<2x32xf32>
    %341 = arith.addf %340, %339 : vector<2x32xf32>
    %342 = arith.divf %340, %341 : vector<2x32xf32>
    %343 = vector.extract_strided_slice %330 {offsets = [0, 64], sizes = [2, 32], strides = [1, 1]} : vector<2x128xf32> to vector<2x32xf32>
    %344 = math.tanh %343 : vector<2x32xf32>
    %345 = vector.extract_strided_slice %330 {offsets = [0, 96], sizes = [2, 32], strides = [1, 1]} : vector<2x128xf32> to vector<2x32xf32>
    %346 = arith.negf %345 : vector<2x32xf32>
    %347 = math.exp %346 : vector<2x32xf32>
    %cst_122 = arith.constant 1.000000e+00 : f32
    %348 = vector.broadcast %cst_122 : f32 to vector<2x32xf32>
    %349 = arith.addf %348, %347 : vector<2x32xf32>
    %350 = arith.divf %348, %349 : vector<2x32xf32>
    %351 = arith.mulf %342, %294 : vector<2x32xf32>
    %352 = arith.mulf %336, %344 : vector<2x32xf32>
    %353 = arith.addf %351, %352 : vector<2x32xf32>
    %354 = math.tanh %353 : vector<2x32xf32>
    %355 = arith.mulf %350, %354 : vector<2x32xf32>
    %356 = arith.truncf %355 : vector<2x32xf32> to vector<2x32xbf16>
    %cst_123 = arith.constant dense<0.000000e+00> : vector<2x4xf32>
    %357 = tpu.matmul %356, %6, %cst_123 {dimension_numbers = #tpu.dot_dimension_numbers<[1], [0], [0], [1], [0, 0, 1, 1], [], []>} : vector<2x32xbf16>, vector<32x4xbf16>, vector<2x4xf32> -> vector<2x4xf32>
    %358 = vector.broadcast %7 : vector<1x4xf32> to vector<2x4xf32>
    %359 = arith.addf %357, %358 : vector<2x4xf32>
    %360 = arith.index_cast %c5_i32 : i32 to index
    %c0_124 = arith.constant 0 : index
    %c0_125 = arith.constant 0 : index
    %361 = vector.load %arg14[%360, %c0_124, %c0_125] : memref<8x2x4xf32, #tpu.memory_space<vmem>>, vector<1x2x4xf32>
    %362 = vector.shape_cast %361 : vector<1x2x4xf32> to vector<2x4xf32>
    %363 = vector.shape_cast %359 : vector<2x4xf32> to vector<1x2x4xf32>
    tpu.vector_store %arg14[%360, %c0_124, %c0_125], %363 {strides = array<i32>} : memref<8x2x4xf32, #tpu.memory_space<vmem>>, vector<1x2x4xf32>,
    %c6_i32 = arith.constant 6 : i32
    %364 = arith.index_cast %c6_i32 : i32 to index
    %c0_126 = arith.constant 0 : index
    %c0_127 = arith.constant 0 : index
    %365 = vector.load %arg1[%364, %c0_126, %c0_127] : memref<8x16x16xbf16, #tpu.memory_space<vmem>>, vector<1x16x16xbf16>
    %366 = vector.shape_cast %365 : vector<1x16x16xbf16> to vector<16x16xbf16>
    %367 = arith.index_cast %c6_i32 : i32 to index
    %c0_128 = arith.constant 0 : index
    %c0_129 = arith.constant 0 : index
    %368 = vector.load %arg2[%367, %c0_128, %c0_129] : memref<8x16x32xbf16, #tpu.memory_space<vmem>>, vector<1x16x32xbf16>
    %369 = vector.shape_cast %368 : vector<1x16x32xbf16> to vector<16x32xbf16>
    %cst_130 = arith.constant dense<0.000000e+00> : vector<16x32xf32>
    %370 = tpu.matmul %366, %369, %cst_130 {dimension_numbers = #tpu.dot_dimension_numbers<[1], [0], [0], [1], [0, 0, 1, 1], [], []>} : vector<16x16xbf16>, vector<16x32xbf16>, vector<16x32xf32> -> vector<16x32xf32>
    %371 = vector.broadcast %1 : vector<1x32xf32> to vector<16x32xf32>
    %372 = arith.addf %370, %371 : vector<16x32xf32>
    %cst_131 = arith.constant 0.000000e+00 : f32
    %373 = vector.broadcast %cst_131 : f32 to vector<16x32xf32>
    %374 = arith.maximumf %372, %373 : vector<16x32xf32>
    %375 = arith.truncf %374 : vector<16x32xf32> to vector<16x32xbf16>
    %cst_132 = arith.constant dense<0.000000e+00> : vector<2x32xf32>
    %376 = tpu.matmul %0, %375, %cst_132 {dimension_numbers = #tpu.dot_dimension_numbers<[1], [0], [0], [1], [0, 0, 1, 1], [], []>} : vector<2x16xbf16>, vector<16x32xbf16>, vector<2x32xf32> -> vector<2x32xf32>
    %377 = arith.truncf %376 : vector<2x32xf32> to vector<2x32xbf16>
    %cst_133 = arith.constant dense<0.000000e+00> : vector<2x128xf32>
    %378 = tpu.matmul %377, %2, %cst_133 {dimension_numbers = #tpu.dot_dimension_numbers<[1], [0], [0], [1], [0, 0, 1, 1], [], []>} : vector<2x32xbf16>, vector<32x128xbf16>, vector<2x128xf32> -> vector<2x128xf32>
    %379 = arith.index_cast %c6_i32 : i32 to index
    %c0_134 = arith.constant 0 : index
    %c0_135 = arith.constant 0 : index
    %380 = vector.load %arg3[%379, %c0_134, %c0_135] : memref<8x2x8xf32, #tpu.memory_space<vmem>>, vector<1x2x8xf32>
    %381 = vector.shape_cast %380 : vector<1x2x8xf32> to vector<2x8xf32>
    %382 = arith.truncf %381 : vector<2x8xf32> to vector<2x8xbf16>
    %cst_136 = arith.constant dense<0.000000e+00> : vector<2x128xf32>
    %383 = tpu.matmul %382, %3, %cst_136 {dimension_numbers = #tpu.dot_dimension_numbers<[1], [0], [0], [1], [0, 0, 1, 1], [], []>} : vector<2x8xbf16>, vector<8x128xbf16>, vector<2x128xf32> -> vector<2x128xf32>
    %384 = arith.addf %378, %383 : vector<2x128xf32>
    %385 = arith.truncf %355 : vector<2x32xf32> to vector<2x32xbf16>
    %cst_137 = arith.constant dense<0.000000e+00> : vector<2x128xf32>
    %386 = tpu.matmul %385, %4, %cst_137 {dimension_numbers = #tpu.dot_dimension_numbers<[1], [0], [0], [1], [0, 0, 1, 1], [], []>} : vector<2x32xbf16>, vector<32x128xbf16>, vector<2x128xf32> -> vector<2x128xf32>
    %387 = arith.addf %384, %386 : vector<2x128xf32>
    %388 = vector.broadcast %5 : vector<1x128xf32> to vector<2x128xf32>
    %389 = arith.addf %387, %388 : vector<2x128xf32>
    %390 = vector.extract_strided_slice %389 {offsets = [0, 0], sizes = [2, 32], strides = [1, 1]} : vector<2x128xf32> to vector<2x32xf32>
    %391 = arith.negf %390 : vector<2x32xf32>
    %392 = math.exp %391 : vector<2x32xf32>
    %cst_138 = arith.constant 1.000000e+00 : f32
    %393 = vector.broadcast %cst_138 : f32 to vector<2x32xf32>
    %394 = arith.addf %393, %392 : vector<2x32xf32>
    %395 = arith.divf %393, %394 : vector<2x32xf32>
    %396 = vector.extract_strided_slice %389 {offsets = [0, 32], sizes = [2, 32], strides = [1, 1]} : vector<2x128xf32> to vector<2x32xf32>
    %397 = arith.negf %396 : vector<2x32xf32>
    %398 = math.exp %397 : vector<2x32xf32>
    %cst_139 = arith.constant 1.000000e+00 : f32
    %399 = vector.broadcast %cst_139 : f32 to vector<2x32xf32>
    %400 = arith.addf %399, %398 : vector<2x32xf32>
    %401 = arith.divf %399, %400 : vector<2x32xf32>
    %402 = vector.extract_strided_slice %389 {offsets = [0, 64], sizes = [2, 32], strides = [1, 1]} : vector<2x128xf32> to vector<2x32xf32>
    %403 = math.tanh %402 : vector<2x32xf32>
    %404 = vector.extract_strided_slice %389 {offsets = [0, 96], sizes = [2, 32], strides = [1, 1]} : vector<2x128xf32> to vector<2x32xf32>
    %405 = arith.negf %404 : vector<2x32xf32>
    %406 = math.exp %405 : vector<2x32xf32>
    %cst_140 = arith.constant 1.000000e+00 : f32
    %407 = vector.broadcast %cst_140 : f32 to vector<2x32xf32>
    %408 = arith.addf %407, %406 : vector<2x32xf32>
    %409 = arith.divf %407, %408 : vector<2x32xf32>
    %410 = arith.mulf %401, %353 : vector<2x32xf32>
    %411 = arith.mulf %395, %403 : vector<2x32xf32>
    %412 = arith.addf %410, %411 : vector<2x32xf32>
    %413 = math.tanh %412 : vector<2x32xf32>
    %414 = arith.mulf %409, %413 : vector<2x32xf32>
    %415 = arith.truncf %414 : vector<2x32xf32> to vector<2x32xbf16>
    %cst_141 = arith.constant dense<0.000000e+00> : vector<2x4xf32>
    %416 = tpu.matmul %415, %6, %cst_141 {dimension_numbers = #tpu.dot_dimension_numbers<[1], [0], [0], [1], [0, 0, 1, 1], [], []>} : vector<2x32xbf16>, vector<32x4xbf16>, vector<2x4xf32> -> vector<2x4xf32>
    %417 = vector.broadcast %7 : vector<1x4xf32> to vector<2x4xf32>
    %418 = arith.addf %416, %417 : vector<2x4xf32>
    %419 = arith.index_cast %c6_i32 : i32 to index
    %c0_142 = arith.constant 0 : index
    %c0_143 = arith.constant 0 : index
    %420 = vector.load %arg14[%419, %c0_142, %c0_143] : memref<8x2x4xf32, #tpu.memory_space<vmem>>, vector<1x2x4xf32>
    %421 = vector.shape_cast %420 : vector<1x2x4xf32> to vector<2x4xf32>
    %422 = vector.shape_cast %418 : vector<2x4xf32> to vector<1x2x4xf32>
    tpu.vector_store %arg14[%419, %c0_142, %c0_143], %422 {strides = array<i32>} : memref<8x2x4xf32, #tpu.memory_space<vmem>>, vector<1x2x4xf32>,
    %c7_i32 = arith.constant 7 : i32
    %423 = arith.index_cast %c7_i32 : i32 to index
    %c0_144 = arith.constant 0 : index
    %c0_145 = arith.constant 0 : index
    %424 = vector.load %arg1[%423, %c0_144, %c0_145] : memref<8x16x16xbf16, #tpu.memory_space<vmem>>, vector<1x16x16xbf16>
    %425 = vector.shape_cast %424 : vector<1x16x16xbf16> to vector<16x16xbf16>
    %426 = arith.index_cast %c7_i32 : i32 to index
    %c0_146 = arith.constant 0 : index
    %c0_147 = arith.constant 0 : index
    %427 = vector.load %arg2[%426, %c0_146, %c0_147] : memref<8x16x32xbf16, #tpu.memory_space<vmem>>, vector<1x16x32xbf16>
    %428 = vector.shape_cast %427 : vector<1x16x32xbf16> to vector<16x32xbf16>
    %cst_148 = arith.constant dense<0.000000e+00> : vector<16x32xf32>
    %429 = tpu.matmul %425, %428, %cst_148 {dimension_numbers = #tpu.dot_dimension_numbers<[1], [0], [0], [1], [0, 0, 1, 1], [], []>} : vector<16x16xbf16>, vector<16x32xbf16>, vector<16x32xf32> -> vector<16x32xf32>
    %430 = vector.broadcast %1 : vector<1x32xf32> to vector<16x32xf32>
    %431 = arith.addf %429, %430 : vector<16x32xf32>
    %cst_149 = arith.constant 0.000000e+00 : f32
    %432 = vector.broadcast %cst_149 : f32 to vector<16x32xf32>
    %433 = arith.maximumf %431, %432 : vector<16x32xf32>
    %434 = arith.truncf %433 : vector<16x32xf32> to vector<16x32xbf16>
    %cst_150 = arith.constant dense<0.000000e+00> : vector<2x32xf32>
    %435 = tpu.matmul %0, %434, %cst_150 {dimension_numbers = #tpu.dot_dimension_numbers<[1], [0], [0], [1], [0, 0, 1, 1], [], []>} : vector<2x16xbf16>, vector<16x32xbf16>, vector<2x32xf32> -> vector<2x32xf32>
    %436 = arith.truncf %435 : vector<2x32xf32> to vector<2x32xbf16>
    %cst_151 = arith.constant dense<0.000000e+00> : vector<2x128xf32>
    %437 = tpu.matmul %436, %2, %cst_151 {dimension_numbers = #tpu.dot_dimension_numbers<[1], [0], [0], [1], [0, 0, 1, 1], [], []>} : vector<2x32xbf16>, vector<32x128xbf16>, vector<2x128xf32> -> vector<2x128xf32>
    %438 = arith.index_cast %c7_i32 : i32 to index
    %c0_152 = arith.constant 0 : index
    %c0_153 = arith.constant 0 : index
    %439 = vector.load %arg3[%438, %c0_152, %c0_153] : memref<8x2x8xf32, #tpu.memory_space<vmem>>, vector<1x2x8xf32>
    %440 = vector.shape_cast %439 : vector<1x2x8xf32> to vector<2x8xf32>
    %441 = arith.truncf %440 : vector<2x8xf32> to vector<2x8xbf16>
    %cst_154 = arith.constant dense<0.000000e+00> : vector<2x128xf32>
    %442 = tpu.matmul %441, %3, %cst_154 {dimension_numbers = #tpu.dot_dimension_numbers<[1], [0], [0], [1], [0, 0, 1, 1], [], []>} : vector<2x8xbf16>, vector<8x128xbf16>, vector<2x128xf32> -> vector<2x128xf32>
    %443 = arith.addf %437, %442 : vector<2x128xf32>
    %444 = arith.truncf %414 : vector<2x32xf32> to vector<2x32xbf16>
    %cst_155 = arith.constant dense<0.000000e+00> : vector<2x128xf32>
    %445 = tpu.matmul %444, %4, %cst_155 {dimension_numbers = #tpu.dot_dimension_numbers<[1], [0], [0], [1], [0, 0, 1, 1], [], []>} : vector<2x32xbf16>, vector<32x128xbf16>, vector<2x128xf32> -> vector<2x128xf32>
    %446 = arith.addf %443, %445 : vector<2x128xf32>
    %447 = vector.broadcast %5 : vector<1x128xf32> to vector<2x128xf32>
    %448 = arith.addf %446, %447 : vector<2x128xf32>
    %449 = vector.extract_strided_slice %448 {offsets = [0, 0], sizes = [2, 32], strides = [1, 1]} : vector<2x128xf32> to vector<2x32xf32>
    %450 = arith.negf %449 : vector<2x32xf32>
    %451 = math.exp %450 : vector<2x32xf32>
    %cst_156 = arith.constant 1.000000e+00 : f32
    %452 = vector.broadcast %cst_156 : f32 to vector<2x32xf32>
    %453 = arith.addf %452, %451 : vector<2x32xf32>
    %454 = arith.divf %452, %453 : vector<2x32xf32>
    %455 = vector.extract_strided_slice %448 {offsets = [0, 32], sizes = [2, 32], strides = [1, 1]} : vector<2x128xf32> to vector<2x32xf32>
    %456 = arith.negf %455 : vector<2x32xf32>
    %457 = math.exp %456 : vector<2x32xf32>
    %cst_157 = arith.constant 1.000000e+00 : f32
    %458 = vector.broadcast %cst_157 : f32 to vector<2x32xf32>
    %459 = arith.addf %458, %457 : vector<2x32xf32>
    %460 = arith.divf %458, %459 : vector<2x32xf32>
    %461 = vector.extract_strided_slice %448 {offsets = [0, 64], sizes = [2, 32], strides = [1, 1]} : vector<2x128xf32> to vector<2x32xf32>
    %462 = math.tanh %461 : vector<2x32xf32>
    %463 = vector.extract_strided_slice %448 {offsets = [0, 96], sizes = [2, 32], strides = [1, 1]} : vector<2x128xf32> to vector<2x32xf32>
    %464 = arith.negf %463 : vector<2x32xf32>
    %465 = math.exp %464 : vector<2x32xf32>
    %cst_158 = arith.constant 1.000000e+00 : f32
    %466 = vector.broadcast %cst_158 : f32 to vector<2x32xf32>
    %467 = arith.addf %466, %465 : vector<2x32xf32>
    %468 = arith.divf %466, %467 : vector<2x32xf32>
    %469 = arith.mulf %460, %412 : vector<2x32xf32>
    %470 = arith.mulf %454, %462 : vector<2x32xf32>
    %471 = arith.addf %469, %470 : vector<2x32xf32>
    %472 = math.tanh %471 : vector<2x32xf32>
    %473 = arith.mulf %468, %472 : vector<2x32xf32>
    %474 = arith.truncf %473 : vector<2x32xf32> to vector<2x32xbf16>
    %cst_159 = arith.constant dense<0.000000e+00> : vector<2x4xf32>
    %475 = tpu.matmul %474, %6, %cst_159 {dimension_numbers = #tpu.dot_dimension_numbers<[1], [0], [0], [1], [0, 0, 1, 1], [], []>} : vector<2x32xbf16>, vector<32x4xbf16>, vector<2x4xf32> -> vector<2x4xf32>
    %476 = vector.broadcast %7 : vector<1x4xf32> to vector<2x4xf32>
    %477 = arith.addf %475, %476 : vector<2x4xf32>
    %478 = arith.index_cast %c7_i32 : i32 to index
    %c0_160 = arith.constant 0 : index
    %c0_161 = arith.constant 0 : index
    %479 = vector.load %arg14[%478, %c0_160, %c0_161] : memref<8x2x4xf32, #tpu.memory_space<vmem>>, vector<1x2x4xf32>
    %480 = vector.shape_cast %479 : vector<1x2x4xf32> to vector<2x4xf32>
    %481 = vector.shape_cast %477 : vector<2x4xf32> to vector<1x2x4xf32>
    tpu.vector_store %arg14[%478, %c0_160, %c0_161], %481 {strides = array<i32>} : memref<8x2x4xf32, #tpu.memory_space<vmem>>, vector<1x2x4xf32>,
    %c8_i32 = arith.constant 8 : i32
    %c0_162 = arith.constant 0 : index
    %c0_163 = arith.constant 0 : index
    %482 = vector.load %arg15[%c0_162, %c0_163] : memref<2x32xf32, #tpu.memory_space<vmem>>, vector<2x32xf32>
    tpu.vector_store %arg15[%c0_162, %c0_163], %473 {strides = array<i32>} : memref<2x32xf32, #tpu.memory_space<vmem>>, vector<2x32xf32>,
    %c0_164 = arith.constant 0 : index
    %c0_165 = arith.constant 0 : index
    %483 = vector.load %arg16[%c0_164, %c0_165] : memref<2x32xf32, #tpu.memory_space<vmem>>, vector<2x32xf32>
    tpu.vector_store %arg16[%c0_164, %c0_165], %471 {strides = array<i32>} : memref<2x32xf32, #tpu.memory_space<vmem>>, vector<2x32xf32>,
    return
  }
  func.func @transform_0(%arg0: i32) -> (i32, i32, i32) {
    %c0_i32 = arith.constant 0 : i32
    %c0_i32_0 = arith.constant 0 : i32
    %c0_i32_1 = arith.constant 0 : i32
    %c0_i32_2 = arith.constant 0 : i32
    return %c0_i32, %c0_i32_0, %c0_i32_1 : i32, i32, i32
  }
  func.func @transform_1(%arg0: i32) -> (i32, i32, i32) {
    %c0_i32 = arith.constant 0 : i32
    %c0_i32_0 = arith.constant 0 : i32
    %c0_i32_1 = arith.constant 0 : i32
    %c0_i32_2 = arith.constant 0 : i32
    return %c0_i32, %c0_i32_0, %c0_i32_1 : i32, i32, i32
  }
  func.func @transform_2(%arg0: i32) -> (i32, i32, i32) {
    %c0_i32 = arith.constant 0 : i32
    %c0_i32_0 = arith.constant 0 : i32
    %c0_i32_1 = arith.constant 0 : i32
    %c0_i32_2 = arith.constant 0 : i32
    return %c0_i32, %c0_i32_0, %c0_i32_1 : i32, i32, i32
  }
  func.func @transform_3(%arg0: i32) -> (i32, i32) {
    %c0_i32 = arith.constant 0 : i32
    %c0_i32_0 = arith.constant 0 : i32
    %c0_i32_1 = arith.constant 0 : i32
    return %c0_i32, %c0_i32_0 : i32, i32
  }
  func.func @transform_4(%arg0: i32) -> (i32, i32) {
    %c0_i32 = arith.constant 0 : i32
    %c0_i32_0 = arith.constant 0 : i32
    %c0_i32_1 = arith.constant 0 : i32
    return %c0_i32, %c0_i32_0 : i32, i32
  }
  func.func @transform_5(%arg0: i32) -> (i32, i32) {
    %c0_i32 = arith.constant 0 : i32
    %c0_i32_0 = arith.constant 0 : i32
    %c0_i32_1 = arith.constant 0 : i32
    return %c0_i32, %c0_i32_0 : i32, i32
  }
  func.func @transform_6(%arg0: i32) -> (i32, i32) {
    %c0_i32 = arith.constant 0 : i32
    %c0_i32_0 = arith.constant 0 : i32
    %c0_i32_1 = arith.constant 0 : i32
    return %c0_i32, %c0_i32_0 : i32, i32
  }
  func.func @transform_7(%arg0: i32) -> (i32, i32) {
    %c0_i32 = arith.constant 0 : i32
    %c0_i32_0 = arith.constant 0 : i32
    %c0_i32_1 = arith.constant 0 : i32
    return %c0_i32, %c0_i32_0 : i32, i32
  }
  func.func @transform_8(%arg0: i32) -> (i32, i32) {
    %c0_i32 = arith.constant 0 : i32
    %c0_i32_0 = arith.constant 0 : i32
    %c0_i32_1 = arith.constant 0 : i32
    return %c0_i32, %c0_i32_0 : i32, i32
  }
  func.func @transform_9(%arg0: i32) -> (i32, i32) {
    %c0_i32 = arith.constant 0 : i32
    %c0_i32_0 = arith.constant 0 : i32
    %c0_i32_1 = arith.constant 0 : i32
    return %c0_i32, %c0_i32_0 : i32, i32
  }
  func.func @transform_10(%arg0: i32) -> (i32, i32) {
    %c0_i32 = arith.constant 0 : i32
    %c0_i32_0 = arith.constant 0 : i32
    %c0_i32_1 = arith.constant 0 : i32
    return %c0_i32, %c0_i32_0 : i32, i32
  }
  func.func @transform_11(%arg0: i32) -> (i32, i32) {
    %c0_i32 = arith.constant 0 : i32
    %c0_i32_0 = arith.constant 0 : i32
    %c0_i32_1 = arith.constant 0 : i32
    return %c0_i32, %c0_i32_0 : i32, i32
  }
  func.func @transform_12(%arg0: i32) -> (i32, i32) {
    %c0_i32 = arith.constant 0 : i32
    %c0_i32_0 = arith.constant 0 : i32
    %c0_i32_1 = arith.constant 0 : i32
    return %c0_i32, %c0_i32_0 : i32, i32
  }
  func.func @transform_13(%arg0: i32) -> (i32, i32, i32) {
    %c0_i32 = arith.constant 0 : i32
    %c0_i32_0 = arith.constant 0 : i32
    %c0_i32_1 = arith.constant 0 : i32
    %c0_i32_2 = arith.constant 0 : i32
    return %c0_i32, %c0_i32_0, %c0_i32_1 : i32, i32, i32
  }
  func.func @transform_14(%arg0: i32) -> (i32, i32) {
    %c0_i32 = arith.constant 0 : i32
    %c0_i32_0 = arith.constant 0 : i32
    %c0_i32_1 = arith.constant 0 : i32
    return %c0_i32, %c0_i32_0 : i32, i32
  }
  func.func @transform_15(%arg0: i32) -> (i32, i32) {
    %c0_i32 = arith.constant 0 : i32
    %c0_i32_0 = arith.constant 0 : i32
    %c0_i32_1 = arith.constant 0 : i32
    return %c0_i32, %c0_i32_0 : i32, i32
  }
}

</mosaic_0001>

<bundles_post_ra>
// kernel: temporal_gnn_forward.1
= control target key start
LH: loop header
LB: loop body
LE: loop exit
PB: predicated region body
PF: predicated region fallthrough
CT: control target
= control target key end

     0   :  { %21 = vsyncpa [#allocation3], 0  ;;  %v3383_v1 = vmov 0.0   ;;  %vm3384_vm0 = vmmov 0   ;;  %vm90_vm1 = vcmask 130048   ;;  %s4083_s0 = inlined_call_operand.vmem [shape: bf16[8,16,16], index: 0, kind: input, shape index: {}]   ;;  %s4084_s1 = inlined_call_operand.vmem [shape: bf16[8,16,32], index: 1, kind: input, shape index: {}]   ;;  %s4085_s2 = inlined_call_operand.vmem [shape: f32[8,2,8], index: 2, kind: input, shape index: {}]   ;;  %s4086_s3 = inlined_call_operand.vmem [shape: bf16[2,16], index: 3, kind: input, shape index: {}]   ;;  %s4087_s4 = inlined_call_operand.vmem [shape: f32[1,32], index: 4, kind: input, shape index: {}]   ;;  %s4088_s5 = inlined_call_operand.vmem [shape: bf16[32,128], index: 5, kind: input, shape index: {}]   ;;  %s4089_s6 = inlined_call_operand.vmem [shape: bf16[8,128], index: 6, kind: input, shape index: {}]   ;;  %s4090_s7 = inlined_call_operand.vmem [shape: bf16[32,128], index: 7, kind: input, shape index: {}]   ;;  %s4091_s8 = inlined_call_operand.vmem [shape: f32[1,128], index: 8, kind: input, shape index: {}]   ;;  %s4092_s9 = inlined_call_operand.vmem [shape: f32[2,32], index: 9, kind: input, shape index: {}]   ;;  %s4093_s10 = inlined_call_operand.vmem [shape: f32[2,32], index: 10, kind: input, shape index: {}]   ;;  %s4094_s11 = inlined_call_operand.vmem [shape: bf16[32,4], index: 11, kind: input, shape index: {}]   ;;  %s4095_s12 = inlined_call_operand.vmem [shape: f32[1,4], index: 12, kind: input, shape index: {}]   ;;  %s4096_s13 = inlined_call_operand.vmem [shape: f32[8,2,4], index: 13, kind: output, shape index: {0}]   ;;  %s4097_s14 = inlined_call_operand.hbm [shape: f32[2,32], index: 14, kind: output, shape index: {1}]   ;;  %s4098_s15 = inlined_call_operand.hbm [shape: f32[2,32], index: 15, kind: output, shape index: {2}]  }
   0x1   :  { %v3239_v0 = vld [vmem:[%s4084_s1] sm:$0xff]   ;;  %2896 = vmatprep.subr.bf16.mxu0 %v3383_v1  ;;  %2902 = vmatprep.subr.bf16.mxu1 %v3383_v1 }
   0x2   :  { %v3240_v2 = vld [vmem:[%s4083_s0] sm:$0xff]   ;;  %2897 = vmatpush3.bf16.msra.mxu0 %v3239_v0  ;;  %2898 = vmatprep.mubr.msk.bf16.mxu0 %vm3384_vm0, %v3383_v1 }
   0x3   :  { %2904 = vmatprep.mubr.msk.bf16.mxu1 %vm3384_vm0, %v3383_v1  ;;  %2908 = vmatprep.subr.bf16.mxu0 %v3383_v1 }
   0x5   :  { %2899 = vmatmul.mubr.msk.bf16.vlgmr.msra.gmra.mrb[0].mxu0 %vm90_vm1, %v3240_v2 }
   0x6   :  { %2910 = vmatprep.mubr.msk.bf16.mxu0 %vm3384_vm0, %v3383_v1 }
   0x7   :  { %22 = vsyncpa [#allocation5], 0  ;;  %v56_v3 = vld [vmem:[%s4089_s6] sm:$0xf]  ;;  %vm188_vm2 = vcmask 1043456   ;;  %vm184_vm3 = vcmask 64512  }
   0x8   :  { %v182_v4 = vld [vmem:[%s4085_s2] sm:$0x3]  ;;  %v3492_v5 = vsel %vm188_vm2, %v56_v3, 0  ;;  %v3506_v8 = vld [vmem:[%s4090_s7 + $0x8] sm:$0xff]   ;;  %vm244_vm4 = vcmask 261120   ;;  %s3385_s25 = smov 64  }
   0x9   :  { %v183_v6 = vpack.c.bf16 %v182_v4, %v182_v4  ;;  %2909 = vmatpush3.bf16.msra.mxu0 %v3492_v5  ;;  %v3498_v7 = vld [vmem:[%s4090_s7] sm:$0xff]   ;;  %v3537_v21 = vld [vmem:[%s4088_s5 + $0x8] sm:$0xff]   ;;  %s3386_s6 = smov 32   ;;  %vm445_vm5 = vcmask 25600   ;;  %vm2614_vm6 = vcmask 254976   ;;  %s3388_s21 = smov [#allocation2]  }
   0xa   :  { %2922 = vmatprep.subr.bf16.mxu0 %v3383_v1  ;;  %v3516_v9 = vld [vmem:[%s4087_s4] ss:$0 sm:$0xff]  ;;  %v3245_v53 = vld [vmem:[%s4084_s1 + $0x8] sm:$0xff]   ;;  %v2679_v60 = vld [vmem:[%s4085_s2 + $0x2] sm:$0x3] }
   0xb   :  { %v3523_v19 = vld [vmem:[%s4086_s3] sm:$0x1]  ;;  %v3246_v54 = vld [vmem:[%s4083_s0 + $0x8] sm:$0xff]   ;;  %v554_v61 = vpack.c.bf16 %v2679_v60, %v2679_v60 }
   0xc   :  { %v3528_v20 = vld [vmem:[%s4088_s5] sm:$0xff]   ;;  %v3592_v62 = vld [vmem:[%s4094_s11 + $0x8] sm:$0xff]  }
   0xd   :  { %2911 = vmatmul.mubr.msk.bf16.vlgmr.msra.gmra.mrb[4].mxu0 %vm184_vm3, %v183_v6  ;;  %v67_v22 = vld [vmem:[%s4092_s9] sm:$0x3] }
   0xe   :  { %2923 = vmatpush3.bf16.msra.mxu0 %v3498_v7  ;;  %2926 = vmatprep.mubr.msk.bf16.mxu0 %vm3384_vm0, %v3383_v1  ;;  %v288_v23 = vpack.c.bf16 %v67_v22, %v67_v22  ;;  %v3556_v40 = vld [vmem:[%s4091_s8] ss:$0 sm:$0xff] }
   0xf   :  { %2924 = vmatprep.subr.bf16.mxu0 %v3383_v1  ;;  %v68_v46 = vld [vmem:[%s4093_s10] sm:$0x3] }
  0x10   :  { %v3583_v59 = vld [vmem:[%s4094_s11] sm:$0xff]  }
  0x12   :  { %2925 = vmatpush3.bf16.msra.mxu0 %v3506_v8 }
  0x13   :  { %2938 = vmatprep.subr.bf16.mxu0 %v3383_v1 }
  0x15   :  { %2927 = vmatmul.mubr.msk.bf16.vlgmr.msra.gmra.mrb[8].mxu0 %vm244_vm4, %v288_v23 }
  0x16   :  { %2940 = vmatprep.mubr.msk.bf16.mxu0 %vm3384_vm0, %v3383_v1  ;;  %2939 = vmatpush3.bf16.msra.mxu0 %v3245_v53 }
  0x17   :  { %2950 = vmatprep.subr.bf16.mxu0 %v3383_v1 }
  0x1d   :  { %2941 = vmatmul.mubr.msk.bf16.vlgmr.msra.gmra.mrb[12].mxu0 %vm90_vm1, %v3246_v54 }
  0x1e   :  { %2951 = vmatpush3.bf16.msra.mxu0 %v3492_v5  ;;  %2952 = vmatprep.mubr.msk.bf16.mxu0 %vm3384_vm0, %v3383_v1 }
  0x1f   :  { %2964 = vmatprep.subr.bf16.mxu0 %v3383_v1 }
  0x25   :  { %2953 = vmatmul.mubr.msk.bf16.vlgmr.msra.gmra.mrb[16].mxu0 %vm184_vm3, %v554_v61 }
  0x26   :  { %2965 = vmatpush3.bf16.msra.mxu0 %v3498_v7  ;;  %2968 = vmatprep.mubr.msk.bf16.mxu0 %vm3384_vm0, %v3383_v1 }
  0x27   :  { %2966 = vmatprep.subr.bf16.mxu0 %v3383_v1 }
  0x2a   :  { %2967 = vmatpush3.bf16.msra.mxu0 %v3506_v8 }
  0x2b   :  { %2980 = vmatprep.subr.bf16.mxu0 %v3383_v1 }
  0xd8   :  { %v128_v10 = vpop.f32.mrb[0].mxu0 }
  0xd9   :  { %v129_v11 = vadd.f32 %v3516_v9, %v128_v10  ;;  %v2900_v12 = vpop.f32.mrb[1].mxu0 }
  0xda   :  { %v131_v13 = vpop.f32.mrb[2].mxu0 }
  0xdb   :  { %v132_v14 = vadd.f32 %v3516_v9, %v131_v13  ;;  %v2901_v15 = vpop.f32.mrb[3].mxu0  ;;  %v135_v16 = vmax.f32 %v129_v11, 0.0 }
  0xdd   :  { %v136_v17 = vmax.f32 %v132_v14, 0.0 }
  0xdf   :  { %v137_v18 = vpack.c.bf16 %v136_v17, %v135_v16 }
  0xe0   :  { %v226_v24 = vpop.f32.mrb[4].mxu0 }
  0xe1   :  { %2903 = vmatpush3.bf16.msra.mxu1 %v137_v18  ;;  %v2912_v25 = vpop.f32.mrb[5].mxu0 }
  0xe2   :  { %2914 = vmatprep.subr.bf16.mxu1 %v3383_v1  ;;  %v229_v26 = vpop.f32.mrb[6].mxu0  ;;  %v3626_v25 = vld [vmem:[%s4095_s12] ss:$0 sm:$0xff] }
  0xe3   :  { %v2913_v27 = vpop.f32.mrb[7].mxu0 }
  0xe4   :  { %2905 = vmatmul.mubr.msk.bf16.vlgmr.msra.gmra.mrb[0].mxu1 %vm90_vm1, %v3523_v19 }
  0xe5   :  { %2915 = vmatpush3.bf16.msra.mxu1 %v3528_v20  ;;  %2918 = vmatprep.mubr.msk.bf16.mxu1 %vm3384_vm0, %v3383_v1 }
  0xe6   :  { %2916 = vmatprep.subr.bf16.mxu1 %v3383_v1 }
  0xe8   :  { %v338_v33 = vpop.f32.mrb[8].mxu0 }
  0xe9   :  { %2917 = vmatpush3.bf16.msra.mxu1 %v3537_v21  ;;  %v2928_v34 = vpop.f32.mrb[9].mxu0 }
  0xea   :  { %2930 = vmatprep.subr.bf16.mxu1 %v3383_v1  ;;  %v341_v35 = vpop.f32.mrb[10].mxu0 }
  0xeb   :  { %v2929_v36 = vpop.f32.mrb[11].mxu0 }
  0xf0   :  { %v501_v0 = vpop.f32.mrb[12].mxu0 }
  0xf1   :  { %v502_v2 = vadd.f32 %v3516_v9, %v501_v0  ;;  %v2942_v3 = vpop.f32.mrb[13].mxu0 }
  0xf2   :  { %v504_v4 = vpop.f32.mrb[14].mxu0 }
  0xf3   :  { %v508_v6 = vmax.f32 %v502_v2, 0.0  ;;  %v505_v10 = vadd.f32 %v3516_v9, %v504_v4  ;;  %v2943_v11 = vpop.f32.mrb[15].mxu0 }
  0xf5   :  { %v509_v12 = vmax.f32 %v505_v10, 0.0 }
  0xf7   :  { %v510_v13 = vpack.c.bf16 %v509_v12, %v508_v6 }
  0xf8   :  { %v592_v17 = vpop.f32.mrb[16].mxu0 }
  0xf9   :  { %v2954_v18 = vpop.f32.mrb[17].mxu0 }
  0xfa   :  { %v595_v22 = vpop.f32.mrb[18].mxu0 }
  0xfb   :  { %v2955_v23 = vpop.f32.mrb[19].mxu0 }
 0x1b7   :  { %v175_v28 = vpop.f32.mrb[0].mxu1 }
 0x1b8   :  { %v181_v29 = vpack.c.bf16 %v175_v28, %v175_v28  ;;  %v2906_v30 = vpop.f32.mrb[1].mxu1 }
 0x1b9   :  { %v178_v31 = vpop.f32.mrb[2].mxu1 }
 0x1ba   :  { %v2907_v32 = vpop.f32.mrb[3].mxu1  ;;  %2919 = vmatmul.mubr.msk.bf16.vlgmr.msra.gmra.mrb[4].mxu1 %vm244_vm4, %v181_v29 }
 0x1bb   :  { %2934 = vmatprep.mubr.msk.bf16.mxu1 %vm3384_vm0, %v3383_v1  ;;  %2931 = vmatpush3.bf16.msra.mxu1 %v3583_v59 }
 0x1bc   :  { %2932 = vmatprep.subr.bf16.mxu1 %v3383_v1 }
 0x1bf   :  { %2933 = vmatpush3.bf16.msra.mxu1 %v3592_v62 }
 0x1c0   :  { %2944 = vmatprep.subr.bf16.mxu1 %v3383_v1 }
 0x28d   :  { %v282_v37 = vpop.f32.mrb[4].mxu1 }
 0x28e   :  { %v283_v38 = vadd.f32 %v282_v37, %v226_v24  ;;  %v2920_v39 = vpop.f32.mrb[5].mxu1 }
 0x28f   :  { %v285_v41 = vpop.f32.mrb[6].mxu1 }
 0x290   :  { %v344_v42 = vadd.f32 %v338_v33, %v283_v38  ;;  %v2921_v43 = vpop.f32.mrb[7].mxu1 }
 0x292   :  { %v351_v44 = vadd.f32 %v3556_v40, %v344_v42 }
 0x294   :  { %3261 = vtanh.f32 %v351_v44  ;;  %v2666_v47 = vmul.f32 -1.442695, %v351_v44 }
 0x296   :  { %3263 = vpow2.f32 %v2666_v47 }
 0x29e   :  { %v3262_v45 = vpop.eup %3261 }
 0x29f   :  { %365 = vrot.lane.b32.xlu0 %v3262_v45, %s3385_s25 }
 0x2a0   :  { %v3264_v48 = vpop.eup %3263 }
 0x2a1   :  { %v355_v49 = vadd.f32 1.0, %v3264_v48 }
 0x2a3   :  { %360 = vrot.lane.b32.xlu0 %v68_v46, %s3386_s6  ;;  %3265 = vrcp.f32 %v355_v49 }
 0x2ad   :  { %v3266_v50 = vpop.eup %3265 }
 0x311   :  { %v366_v51 = vpop.permute.xlu0 %365 }
 0x312   :  { %v368_v52 = vmul.f32 %v3266_v50, %v366_v51 }
 0x314   :  { %370 = vrot.lane.b32.xlu1 %v368_v52, %s3386_s6 }
 0x315   :  { %v361_v55 = vpop.permute.xlu0 %360 }
 0x316   :  { %v363_v56 = vmul.f32 %v3266_v50, %v361_v55  ;;  %v3249_v55 = vld [vmem:[%s4084_s1 + $0x10] sm:$0xff]  }
 0x386   :  { %v371_v57 = vpop.permute.xlu1 %370 }
 0x387   :  { %v3577_v58 = vadd.f32 %v371_v57, %v363_v56  ;;  %v3250_v56 = vld [vmem:[%s4083_s0 + $0x10] sm:$0xff]  }
 0x389   :  { %3267 = vtanh.f32 %v3577_v58 }
 0x393   :  { %v3268_v63 = vpop.eup %3267 }
 0x394   :  { %376 = vrot.lane.b32.xlu1 %v3268_v63, %s3385_s25  ;;  %v2694_v63 = vld [vmem:[%s4085_s2 + $0x4] sm:$0x3] }
 0x395   :  { %v863_v0 = vpack.c.bf16 %v2694_v63, %v2694_v63 }
 0x406   :  { %v377_v14 = vpop.permute.xlu1 %376 }
 0x407   :  { %v379_v15 = vmul.f32 %v3266_v50, %v377_v14 }
 0x409   :  { %v380_v16 = vpack.c.bf16 %v379_v15, %v379_v15 }
 0x40b   :  { %388 = vrot.lane.b32.xlu0 %v380_v16, %s3386_s6 }
 0x47d   :  { %v389_v24 = vpop.permute.xlu0 %388 }
 0x47e   :  { %2935 = vmatmul.mubr.msk.bf16.vlgmr.msra.gmra.mrb[8].mxu1 %vm244_vm4, %v389_v24  ;;  %2969 = vmatmul.mubr.msk.bf16.vlgmr.msra.gmra.mrb[20].mxu0 %vm244_vm4, %v389_v24 }
 0x47f   :  { %2945 = vmatpush3.bf16.msra.mxu1 %v510_v13  ;;  %2946 = vmatprep.mubr.msk.bf16.mxu1 %vm3384_vm0, %v3383_v1 }
 0x480   :  { %2956 = vmatprep.subr.bf16.mxu1 %v3383_v1  ;;  %2982 = vmatprep.mubr.msk.bf16.mxu0 %vm3384_vm0, %v3383_v1 }
 0x481   :  { %2981 = vmatpush3.bf16.msra.mxu0 %v3249_v55 }
 0x482   :  { %2992 = vmatprep.subr.bf16.mxu0 %v3383_v1 }
 0x486   :  { %2947 = vmatmul.mubr.msk.bf16.vlgmr.msra.gmra.mrb[12].mxu1 %vm90_vm1, %v3523_v19  ;;  %2983 = vmatmul.mubr.msk.bf16.vlgmr.msra.gmra.mrb[24].mxu0 %vm90_vm1, %v3250_v56  ;;  %v3251_v56 = vld [vmem:[%s4084_s1 + $0x18] sm:$0xff]  }
 0x487   :  { %2957 = vmatpush3.bf16.msra.mxu1 %v3528_v20  ;;  %2960 = vmatprep.mubr.msk.bf16.mxu1 %vm3384_vm0, %v3383_v1 }
 0x488   :  { %2958 = vmatprep.subr.bf16.mxu1 %v3383_v1  ;;  %2993 = vmatpush3.bf16.msra.mxu0 %v3492_v5 }
 0x489   :  { %2994 = vmatprep.mubr.msk.bf16.mxu0 %vm3384_vm0, %v3383_v1  ;;  %3006 = vmatprep.subr.bf16.mxu0 %v3383_v1 }
 0x48b   :  { %2959 = vmatpush3.bf16.msra.mxu1 %v3537_v21 }
 0x48c   :  { %2972 = vmatprep.subr.bf16.mxu1 %v3383_v1 }
 0x48e   :  { %2995 = vmatmul.mubr.msk.bf16.vlgmr.msra.gmra.mrb[28].mxu0 %vm184_vm3, %v863_v0 }
 0x48f   :  { %3007 = vmatpush3.bf16.msra.mxu0 %v3498_v7  ;;  %3010 = vmatprep.mubr.msk.bf16.mxu0 %vm3384_vm0, %v3383_v1 }
 0x490   :  { %3008 = vmatprep.subr.bf16.mxu0 %v3383_v1 }
 0x493   :  { %3009 = vmatpush3.bf16.msra.mxu0 %v3506_v8 }
 0x494   :  { %3022 = vmatprep.subr.bf16.mxu0 %v3383_v1 }
 0x551   :  { %v439_v26 = vpop.f32.mrb[8].mxu1  ;;  %v675_v27 = vpop.f32.mrb[20].mxu0 }
 0x552   :  { %v440_v28 = vadd.f32 %v3626_v25, %v439_v26  ;;  %v2936_v29 = vpop.f32.mrb[9].mxu1  ;;  %v2970_v30 = vpop.f32.mrb[21].mxu0 }
 0x553   :  { %v442_v31 = vpop.f32.mrb[10].mxu1  ;;  %v678_v32 = vpop.f32.mrb[22].mxu0 }
 0x554   :  { %446 = vst.msk [vmem:[%s4096_s13] sm:$0x3] %vm445_vm5, %v440_v28  ;;  %v2937_v33 = vpop.f32.mrb[11].mxu1  ;;  %v2971_v34 = vpop.f32.mrb[23].mxu0 }
 0x559   :  { %v545_v35 = vpop.f32.mrb[12].mxu1  ;;  %v810_v2 = vpop.f32.mrb[24].mxu0 }
 0x55a   :  { %v551_v36 = vpack.c.bf16 %v545_v35, %v545_v35  ;;  %v2948_v37 = vpop.f32.mrb[13].mxu1  ;;  %v811_v3 = vadd.f32 %v3516_v9, %v810_v2  ;;  %v2984_v4 = vpop.f32.mrb[25].mxu0 }
 0x55b   :  { %v548_v38 = vpop.f32.mrb[14].mxu1  ;;  %v813_v6 = vpop.f32.mrb[26].mxu0 }
 0x55c   :  { %v2949_v39 = vpop.f32.mrb[15].mxu1  ;;  %2961 = vmatmul.mubr.msk.bf16.vlgmr.msra.gmra.mrb[16].mxu1 %vm244_vm4, %v551_v36  ;;  %v817_v10 = vmax.f32 %v811_v3, 0.0  ;;  %v814_v11 = vadd.f32 %v3516_v9, %v813_v6  ;;  %v2985_v12 = vpop.f32.mrb[27].mxu0 }
 0x55d   :  { %2973 = vmatpush3.bf16.msra.mxu1 %v3583_v59  ;;  %2976 = vmatprep.mubr.msk.bf16.mxu1 %vm3384_vm0, %v3383_v1 }
 0x55e   :  { %2974 = vmatprep.subr.bf16.mxu1 %v3383_v1  ;;  %v818_v13 = vmax.f32 %v814_v11, 0.0 }
 0x560   :  { %v819_v14 = vpack.c.bf16 %v818_v13, %v817_v10 }
 0x561   :  { %2975 = vmatpush3.bf16.msra.mxu1 %v3592_v62  ;;  %v901_v18 = vpop.f32.mrb[28].mxu0 }
 0x562   :  { %2986 = vmatprep.subr.bf16.mxu1 %v3383_v1  ;;  %v2996_v22 = vpop.f32.mrb[29].mxu0 }
 0x563   :  { %v904_v23 = vpop.f32.mrb[30].mxu0 }
 0x564   :  { %v2997_v24 = vpop.f32.mrb[31].mxu0 }
 0x62f   :  { %v635_v41 = vpop.f32.mrb[16].mxu1 }
 0x630   :  { %v636_v42 = vadd.f32 %v635_v41, %v592_v17  ;;  %v2962_v43 = vpop.f32.mrb[17].mxu1 }
 0x631   :  { %v638_v44 = vpop.f32.mrb[18].mxu1 }
 0x632   :  { %v681_v45 = vadd.f32 %v675_v27, %v636_v42  ;;  %v2963_v46 = vpop.f32.mrb[19].mxu1 }
 0x634   :  { %v682_v47 = vadd.f32 %v3556_v40, %v681_v45 }
 0x636   :  { %3269 = vtanh.f32 %v682_v47  ;;  %v2683_v49 = vmul.f32 -1.442695, %v682_v47 }
 0x638   :  { %3271 = vpow2.f32 %v2683_v49 }
 0x640   :  { %v3270_v48 = vpop.eup %3269 }
 0x641   :  { %692 = vrot.lane.b32.xlu1 %v3270_v48, %s3385_s25 }
 0x642   :  { %v3272_v50 = vpop.eup %3271 }
 0x643   :  { %v686_v51 = vadd.f32 1.0, %v3272_v50 }
 0x645   :  { %3273 = vrcp.f32 %v686_v51 }
 0x64f   :  { %v3274_v52 = vpop.eup %3273 }
 0x650   :  { %v690_v57 = vmul.f32 %v3274_v52, %v3577_v58 }
 0x6b3   :  { %v693_v53 = vpop.permute.xlu1 %692 }
 0x6b4   :  { %v695_v54 = vmul.f32 %v3274_v52, %v693_v53 }
 0x6b6   :  { %697 = vrot.lane.b32.xlu0 %v695_v54, %s3386_s6 }
 0x728   :  { %v698_v60 = vpop.permute.xlu0 %697 }
 0x729   :  { %v3656_v61 = vadd.f32 %v698_v60, %v690_v57  ;;  %v3252_v57 = vld [vmem:[%s4083_s0 + $0x18] sm:$0xff]  }
 0x72b   :  { %3275 = vtanh.f32 %v3656_v61 }
 0x735   :  { %v3276_v58 = vpop.eup %3275 }
 0x736   :  { %703 = vrot.lane.b32.xlu1 %v3276_v58, %s3385_s25  ;;  %v2709_v58 = vld [vmem:[%s4085_s2 + $0x6] sm:$0x3] }
 0x737   :  { %v1172_v2 = vpack.c.bf16 %v2709_v58, %v2709_v58 }
 0x7a8   :  { %v704_v15 = vpop.permute.xlu1 %703 }
 0x7a9   :  { %v706_v16 = vmul.f32 %v3274_v52, %v704_v15 }
 0x7ab   :  { %v707_v17 = vpack.c.bf16 %v706_v16, %v706_v16 }
 0x7ad   :  { %709 = vrot.lane.b32.xlu0 %v707_v17, %s3386_s6 }
 0x81f   :  { %v710_v26 = vpop.permute.xlu0 %709 }
 0x820   :  { %2977 = vmatmul.mubr.msk.bf16.vlgmr.msra.gmra.mrb[20].mxu1 %vm244_vm4, %v710_v26  ;;  %3011 = vmatmul.mubr.msk.bf16.vlgmr.msra.gmra.mrb[32].mxu0 %vm244_vm4, %v710_v26 }
 0x821   :  { %2987 = vmatpush3.bf16.msra.mxu1 %v819_v14  ;;  %2988 = vmatprep.mubr.msk.bf16.mxu1 %vm3384_vm0, %v3383_v1 }
 0x822   :  { %2998 = vmatprep.subr.bf16.mxu1 %v3383_v1  ;;  %3024 = vmatprep.mubr.msk.bf16.mxu0 %vm3384_vm0, %v3383_v1 }
 0x823   :  { %3023 = vmatpush3.bf16.msra.mxu0 %v3251_v56 }
 0x824   :  { %3034 = vmatprep.subr.bf16.mxu0 %v3383_v1 }
 0x828   :  { %2989 = vmatmul.mubr.msk.bf16.vlgmr.msra.gmra.mrb[24].mxu1 %vm90_vm1, %v3523_v19  ;;  %3025 = vmatmul.mubr.msk.bf16.vlgmr.msra.gmra.mrb[36].mxu0 %vm90_vm1, %v3252_v57  ;;  %v3253_v57 = vld [vmem:[%s4084_s1 + $0x20] sm:$0xff]  }
 0x829   :  { %2999 = vmatpush3.bf16.msra.mxu1 %v3528_v20  ;;  %3002 = vmatprep.mubr.msk.bf16.mxu1 %vm3384_vm0, %v3383_v1 }
 0x82a   :  { %3000 = vmatprep.subr.bf16.mxu1 %v3383_v1  ;;  %3035 = vmatpush3.bf16.msra.mxu0 %v3492_v5 }
 0x82b   :  { %3036 = vmatprep.mubr.msk.bf16.mxu0 %vm3384_vm0, %v3383_v1  ;;  %3048 = vmatprep.subr.bf16.mxu0 %v3383_v1 }
 0x82d   :  { %3001 = vmatpush3.bf16.msra.mxu1 %v3537_v21 }
 0x82e   :  { %3014 = vmatprep.subr.bf16.mxu1 %v3383_v1 }
 0x830   :  { %3037 = vmatmul.mubr.msk.bf16.vlgmr.msra.gmra.mrb[40].mxu0 %vm184_vm3, %v1172_v2 }
 0x831   :  { %3049 = vmatpush3.bf16.msra.mxu0 %v3498_v7  ;;  %3052 = vmatprep.mubr.msk.bf16.mxu0 %vm3384_vm0, %v3383_v1 }
 0x832   :  { %3050 = vmatprep.subr.bf16.mxu0 %v3383_v1 }
 0x835   :  { %3051 = vmatpush3.bf16.msra.mxu0 %v3506_v8 }
 0x836   :  { %3064 = vmatprep.subr.bf16.mxu0 %v3383_v1 }
 0x8f3   :  { %v748_v27 = vpop.f32.mrb[20].mxu1  ;;  %v984_v28 = vpop.f32.mrb[32].mxu0 }
 0x8f4   :  { %v749_v29 = vadd.f32 %v3626_v25, %v748_v27  ;;  %v2978_v30 = vpop.f32.mrb[21].mxu1  ;;  %v3012_v31 = vpop.f32.mrb[33].mxu0 }
 0x8f5   :  { %v751_v32 = vpop.f32.mrb[22].mxu1  ;;  %v987_v33 = vpop.f32.mrb[34].mxu0 }
 0x8f6   :  { %2685 = vst.msk [vmem:[%s4096_s13 + $0x2] sm:$0x3] %vm445_vm5, %v749_v29  ;;  %v2979_v34 = vpop.f32.mrb[23].mxu1  ;;  %v3013_v35 = vpop.f32.mrb[35].mxu0 }
 0x8fb   :  { %v854_v36 = vpop.f32.mrb[24].mxu1  ;;  %v1119_v3 = vpop.f32.mrb[36].mxu0 }
 0x8fc   :  { %v860_v37 = vpack.c.bf16 %v854_v36, %v854_v36  ;;  %v2990_v38 = vpop.f32.mrb[25].mxu1  ;;  %v1120_v4 = vadd.f32 %v3516_v9, %v1119_v3  ;;  %v3026_v6 = vpop.f32.mrb[37].mxu0 }
 0x8fd   :  { %v857_v39 = vpop.f32.mrb[26].mxu1  ;;  %v1122_v10 = vpop.f32.mrb[38].mxu0 }
 0x8fe   :  { %v2991_v41 = vpop.f32.mrb[27].mxu1  ;;  %3003 = vmatmul.mubr.msk.bf16.vlgmr.msra.gmra.mrb[28].mxu1 %vm244_vm4, %v860_v37  ;;  %v1126_v11 = vmax.f32 %v1120_v4, 0.0  ;;  %v1123_v12 = vadd.f32 %v3516_v9, %v1122_v10  ;;  %v3027_v13 = vpop.f32.mrb[39].mxu0 }
 0x8ff   :  { %3015 = vmatpush3.bf16.msra.mxu1 %v3583_v59  ;;  %3018 = vmatprep.mubr.msk.bf16.mxu1 %vm3384_vm0, %v3383_v1 }
 0x900   :  { %3016 = vmatprep.subr.bf16.mxu1 %v3383_v1  ;;  %v1127_v14 = vmax.f32 %v1123_v12, 0.0 }
 0x902   :  { %v1128_v15 = vpack.c.bf16 %v1127_v14, %v1126_v11 }
 0x903   :  { %3017 = vmatpush3.bf16.msra.mxu1 %v3592_v62  ;;  %v1210_v22 = vpop.f32.mrb[40].mxu0 }
 0x904   :  { %3028 = vmatprep.subr.bf16.mxu1 %v3383_v1  ;;  %v3038_v23 = vpop.f32.mrb[41].mxu0 }
 0x905   :  { %v1213_v24 = vpop.f32.mrb[42].mxu0 }
 0x906   :  { %v3039_v26 = vpop.f32.mrb[43].mxu0 }
 0x9d1   :  { %v944_v42 = vpop.f32.mrb[28].mxu1 }
 0x9d2   :  { %v945_v43 = vadd.f32 %v944_v42, %v901_v18  ;;  %v3004_v44 = vpop.f32.mrb[29].mxu1 }
 0x9d3   :  { %v947_v45 = vpop.f32.mrb[30].mxu1 }
 0x9d4   :  { %v990_v46 = vadd.f32 %v984_v28, %v945_v43  ;;  %v3005_v47 = vpop.f32.mrb[31].mxu1 }
 0x9d6   :  { %v991_v48 = vadd.f32 %v3556_v40, %v990_v46 }
 0x9d8   :  { %3277 = vtanh.f32 %v991_v48  ;;  %v2698_v50 = vmul.f32 -1.442695, %v991_v48 }
 0x9da   :  { %3279 = vpow2.f32 %v2698_v50 }
 0x9e2   :  { %v3278_v49 = vpop.eup %3277 }
 0x9e3   :  { %1001 = vrot.lane.b32.xlu1 %v3278_v49, %s3385_s25 }
 0x9e4   :  { %v3280_v51 = vpop.eup %3279 }
 0x9e5   :  { %v995_v52 = vadd.f32 1.0, %v3280_v51 }
 0x9e7   :  { %3281 = vrcp.f32 %v995_v52 }
 0x9f1   :  { %v3282_v53 = vpop.eup %3281 }
 0x9f2   :  { %v999_v60 = vmul.f32 %v3282_v53, %v3656_v61 }
 0xa55   :  { %v1002_v54 = vpop.permute.xlu1 %1001 }
 0xa56   :  { %v1004_v55 = vmul.f32 %v3282_v53, %v1002_v54 }
 0xa58   :  { %1006 = vrot.lane.b32.xlu0 %v1004_v55, %s3386_s6 }
 0xaca   :  { %v1007_v63 = vpop.permute.xlu0 %1006 }
 0xacb   :  { %v3716_v0 = vadd.f32 %v1007_v63, %v999_v60  ;;  %v3254_v60 = vld [vmem:[%s4083_s0 + $0x20] sm:$0xff]  }
 0xacd   :  { %3283 = vtanh.f32 %v3716_v0 }
 0xad7   :  { %v3284_v61 = vpop.eup %3283 }
 0xad8   :  { %1012 = vrot.lane.b32.xlu1 %v3284_v61, %s3385_s25  ;;  %v2724_v61 = vld [vmem:[%s4085_s2 + $0x8] sm:$0x3] }
 0xad9   :  { %v1481_v3 = vpack.c.bf16 %v2724_v61, %v2724_v61 }
 0xb4a   :  { %v1013_v16 = vpop.permute.xlu1 %1012 }
 0xb4b   :  { %v1015_v17 = vmul.f32 %v3282_v53, %v1013_v16 }
 0xb4d   :  { %v1016_v18 = vpack.c.bf16 %v1015_v17, %v1015_v17 }
 0xb4f   :  { %1018 = vrot.lane.b32.xlu0 %v1016_v18, %s3386_s6 }
 0xbc1   :  { %v1019_v27 = vpop.permute.xlu0 %1018 }
 0xbc2   :  { %3019 = vmatmul.mubr.msk.bf16.vlgmr.msra.gmra.mrb[32].mxu1 %vm244_vm4, %v1019_v27  ;;  %3053 = vmatmul.mubr.msk.bf16.vlgmr.msra.gmra.mrb[44].mxu0 %vm244_vm4, %v1019_v27 }
 0xbc3   :  { %3029 = vmatpush3.bf16.msra.mxu1 %v1128_v15  ;;  %3030 = vmatprep.mubr.msk.bf16.mxu1 %vm3384_vm0, %v3383_v1 }
 0xbc4   :  { %3040 = vmatprep.subr.bf16.mxu1 %v3383_v1  ;;  %3066 = vmatprep.mubr.msk.bf16.mxu0 %vm3384_vm0, %v3383_v1 }
 0xbc5   :  { %3065 = vmatpush3.bf16.msra.mxu0 %v3253_v57 }
 0xbc6   :  { %3076 = vmatprep.subr.bf16.mxu0 %v3383_v1 }
 0xbca   :  { %3031 = vmatmul.mubr.msk.bf16.vlgmr.msra.gmra.mrb[36].mxu1 %vm90_vm1, %v3523_v19  ;;  %3067 = vmatmul.mubr.msk.bf16.vlgmr.msra.gmra.mrb[48].mxu0 %vm90_vm1, %v3254_v60  ;;  %v3255_v60 = vld [vmem:[%s4084_s1 + $0x28] sm:$0xff]  }
 0xbcb   :  { %3041 = vmatpush3.bf16.msra.mxu1 %v3528_v20  ;;  %3044 = vmatprep.mubr.msk.bf16.mxu1 %vm3384_vm0, %v3383_v1 }
 0xbcc   :  { %3042 = vmatprep.subr.bf16.mxu1 %v3383_v1  ;;  %3077 = vmatpush3.bf16.msra.mxu0 %v3492_v5 }
 0xbcd   :  { %3078 = vmatprep.mubr.msk.bf16.mxu0 %vm3384_vm0, %v3383_v1  ;;  %3090 = vmatprep.subr.bf16.mxu0 %v3383_v1 }
 0xbcf   :  { %3043 = vmatpush3.bf16.msra.mxu1 %v3537_v21 }
 0xbd0   :  { %3056 = vmatprep.subr.bf16.mxu1 %v3383_v1 }
 0xbd2   :  { %3079 = vmatmul.mubr.msk.bf16.vlgmr.msra.gmra.mrb[52].mxu0 %vm184_vm3, %v1481_v3 }
 0xbd3   :  { %3091 = vmatpush3.bf16.msra.mxu0 %v3498_v7  ;;  %3094 = vmatprep.mubr.msk.bf16.mxu0 %vm3384_vm0, %v3383_v1 }
 0xbd4   :  { %3092 = vmatprep.subr.bf16.mxu0 %v3383_v1 }
 0xbd7   :  { %3093 = vmatpush3.bf16.msra.mxu0 %v3506_v8 }
 0xbd8   :  { %3106 = vmatprep.subr.bf16.mxu0 %v3383_v1 }
 0xc95   :  { %v1057_v28 = vpop.f32.mrb[32].mxu1  ;;  %v1293_v29 = vpop.f32.mrb[44].mxu0 }
 0xc96   :  { %v1058_v30 = vadd.f32 %v3626_v25, %v1057_v28  ;;  %v3020_v31 = vpop.f32.mrb[33].mxu1  ;;  %v3054_v32 = vpop.f32.mrb[45].mxu0 }
 0xc97   :  { %v1060_v33 = vpop.f32.mrb[34].mxu1  ;;  %v1296_v34 = vpop.f32.mrb[46].mxu0 }
 0xc98   :  { %2700 = vst.msk [vmem:[%s4096_s13 + $0x4] sm:$0x3] %vm445_vm5, %v1058_v30  ;;  %v3021_v35 = vpop.f32.mrb[35].mxu1  ;;  %v3055_v36 = vpop.f32.mrb[47].mxu0 }
 0xc9d   :  { %v1163_v37 = vpop.f32.mrb[36].mxu1  ;;  %v1428_v4 = vpop.f32.mrb[48].mxu0 }
 0xc9e   :  { %v1169_v38 = vpack.c.bf16 %v1163_v37, %v1163_v37  ;;  %v3032_v39 = vpop.f32.mrb[37].mxu1  ;;  %v1429_v6 = vadd.f32 %v3516_v9, %v1428_v4  ;;  %v3068_v10 = vpop.f32.mrb[49].mxu0 }
 0xc9f   :  { %v1166_v41 = vpop.f32.mrb[38].mxu1  ;;  %v1431_v11 = vpop.f32.mrb[50].mxu0 }
 0xca0   :  { %v3033_v42 = vpop.f32.mrb[39].mxu1  ;;  %3045 = vmatmul.mubr.msk.bf16.vlgmr.msra.gmra.mrb[40].mxu1 %vm244_vm4, %v1169_v38  ;;  %v1435_v12 = vmax.f32 %v1429_v6, 0.0  ;;  %v1432_v13 = vadd.f32 %v3516_v9, %v1431_v11  ;;  %v3069_v14 = vpop.f32.mrb[51].mxu0 }
 0xca1   :  { %3057 = vmatpush3.bf16.msra.mxu1 %v3583_v59  ;;  %3060 = vmatprep.mubr.msk.bf16.mxu1 %vm3384_vm0, %v3383_v1 }
 0xca2   :  { %3058 = vmatprep.subr.bf16.mxu1 %v3383_v1  ;;  %v1436_v15 = vmax.f32 %v1432_v13, 0.0 }
 0xca4   :  { %v1437_v16 = vpack.c.bf16 %v1436_v15, %v1435_v12 }
 0xca5   :  { %3059 = vmatpush3.bf16.msra.mxu1 %v3592_v62  ;;  %v1519_v23 = vpop.f32.mrb[52].mxu0 }
 0xca6   :  { %3070 = vmatprep.subr.bf16.mxu1 %v3383_v1  ;;  %v3080_v24 = vpop.f32.mrb[53].mxu0 }
 0xca7   :  { %v1522_v26 = vpop.f32.mrb[54].mxu0 }
 0xca8   :  { %v3081_v27 = vpop.f32.mrb[55].mxu0 }
 0xd73   :  { %v1253_v43 = vpop.f32.mrb[40].mxu1 }
 0xd74   :  { %v1254_v44 = vadd.f32 %v1253_v43, %v1210_v22  ;;  %v3046_v45 = vpop.f32.mrb[41].mxu1 }
 0xd75   :  { %v1256_v46 = vpop.f32.mrb[42].mxu1 }
 0xd76   :  { %v1299_v47 = vadd.f32 %v1293_v29, %v1254_v44  ;;  %v3047_v48 = vpop.f32.mrb[43].mxu1 }
 0xd78   :  { %v1300_v49 = vadd.f32 %v3556_v40, %v1299_v47 }
 0xd7a   :  { %3285 = vtanh.f32 %v1300_v49  ;;  %v2713_v51 = vmul.f32 -1.442695, %v1300_v49 }
 0xd7c   :  { %3287 = vpow2.f32 %v2713_v51 }
 0xd84   :  { %v3286_v50 = vpop.eup %3285 }
 0xd85   :  { %1310 = vrot.lane.b32.xlu1 %v3286_v50, %s3385_s25 }
 0xd86   :  { %v3288_v52 = vpop.eup %3287 }
 0xd87   :  { %v1304_v53 = vadd.f32 1.0, %v3288_v52 }
 0xd89   :  { %3289 = vrcp.f32 %v1304_v53 }
 0xd93   :  { %v3290_v54 = vpop.eup %3289 }
 0xd94   :  { %v1308_v63 = vmul.f32 %v3290_v54, %v3716_v0 }
 0xdf7   :  { %v1311_v55 = vpop.permute.xlu1 %1310 }
 0xdf8   :  { %v1313_v56 = vmul.f32 %v3290_v54, %v1311_v55 }
 0xdfa   :  { %1315 = vrot.lane.b32.xlu0 %v1313_v56, %s3386_s6 }
 0xe6c   :  { %v1316_v58 = vpop.permute.xlu0 %1315 }
 0xe6d   :  { %v3776_v2 = vadd.f32 %v1316_v58, %v1308_v63  ;;  %v3256_v63 = vld [vmem:[%s4083_s0 + $0x28] sm:$0xff]  }
 0xe6f   :  { %3291 = vtanh.f32 %v3776_v2 }
 0xe79   :  { %v3292_v0 = vpop.eup %3291 }
 0xe7a   :  { %1321 = vrot.lane.b32.xlu1 %v3292_v0, %s3385_s25  ;;  %v2739_v0 = vld [vmem:[%s4085_s2 + $0xa] sm:$0x3] }
 0xe7b   :  { %v1790_v4 = vpack.c.bf16 %v2739_v0, %v2739_v0 }
 0xeec   :  { %v1322_v17 = vpop.permute.xlu1 %1321 }
 0xeed   :  { %v1324_v18 = vmul.f32 %v3290_v54, %v1322_v17 }
 0xeef   :  { %v1325_v22 = vpack.c.bf16 %v1324_v18, %v1324_v18 }
 0xef1   :  { %1327 = vrot.lane.b32.xlu0 %v1325_v22, %s3386_s6 }
 0xf63   :  { %v1328_v28 = vpop.permute.xlu0 %1327 }
 0xf64   :  { %3061 = vmatmul.mubr.msk.bf16.vlgmr.msra.gmra.mrb[44].mxu1 %vm244_vm4, %v1328_v28  ;;  %3095 = vmatmul.mubr.msk.bf16.vlgmr.msra.gmra.mrb[56].mxu0 %vm244_vm4, %v1328_v28 }
 0xf65   :  { %3071 = vmatpush3.bf16.msra.mxu1 %v1437_v16  ;;  %3072 = vmatprep.mubr.msk.bf16.mxu1 %vm3384_vm0, %v3383_v1 }
 0xf66   :  { %3082 = vmatprep.subr.bf16.mxu1 %v3383_v1  ;;  %3108 = vmatprep.mubr.msk.bf16.mxu0 %vm3384_vm0, %v3383_v1 }
 0xf67   :  { %3107 = vmatpush3.bf16.msra.mxu0 %v3255_v60 }
 0xf68   :  { %3118 = vmatprep.subr.bf16.mxu0 %v3383_v1 }
 0xf6c   :  { %3073 = vmatmul.mubr.msk.bf16.vlgmr.msra.gmra.mrb[48].mxu1 %vm90_vm1, %v3523_v19  ;;  %3109 = vmatmul.mubr.msk.bf16.vlgmr.msra.gmra.mrb[60].mxu0 %vm90_vm1, %v3256_v63  ;;  %v3915_v63 = vld [vmem:[%s4090_s7 + $0x8] sm:$0xff]  }
 0xf6d   :  { %3083 = vmatpush3.bf16.msra.mxu1 %v3528_v20  ;;  %3086 = vmatprep.mubr.msk.bf16.mxu1 %vm3384_vm0, %v3383_v1 }
 0xf6e   :  { %3084 = vmatprep.subr.bf16.mxu1 %v3383_v1  ;;  %3119 = vmatpush3.bf16.msra.mxu0 %v3492_v5 }
 0xf6f   :  { %3120 = vmatprep.mubr.msk.bf16.mxu0 %vm3384_vm0, %v3383_v1  ;;  %3132 = vmatprep.subr.bf16.mxu0 %v3383_v1 }
 0xf71   :  { %3085 = vmatpush3.bf16.msra.mxu1 %v3537_v21 }
 0xf72   :  { %3098 = vmatprep.subr.bf16.mxu1 %v3383_v1 }
 0xf74   :  { %3121 = vmatmul.mubr.msk.bf16.vlgmr.msra.gmra.mrb[64].mxu0 %vm184_vm3, %v1790_v4 }
 0xf75   :  { %3133 = vmatpush3.bf16.msra.mxu0 %v3498_v7  ;;  %3136 = vmatprep.mubr.msk.bf16.mxu0 %vm3384_vm0, %v3383_v1 }
 0xf76   :  { %3134 = vmatprep.subr.bf16.mxu0 %v3383_v1 }
 0xf79   :  { %3135 = vmatpush3.bf16.msra.mxu0 %v3506_v8 }
 0xf7a   :  { %3148 = vmatprep.subr.bf16.mxu0 %v3383_v1 }
0x1037   :  { %v1366_v29 = vpop.f32.mrb[44].mxu1  ;;  %v1602_v30 = vpop.f32.mrb[56].mxu0 }
0x1038   :  { %v1367_v31 = vadd.f32 %v3626_v25, %v1366_v29  ;;  %v3062_v32 = vpop.f32.mrb[45].mxu1  ;;  %v3096_v33 = vpop.f32.mrb[57].mxu0 }
0x1039   :  { %v1369_v34 = vpop.f32.mrb[46].mxu1  ;;  %v1605_v35 = vpop.f32.mrb[58].mxu0 }
0x103a   :  { %2715 = vst.msk [vmem:[%s4096_s13 + $0x6] sm:$0x3] %vm445_vm5, %v1367_v31  ;;  %v3063_v36 = vpop.f32.mrb[47].mxu1  ;;  %v3097_v37 = vpop.f32.mrb[59].mxu0 }
0x103f   :  { %v1472_v38 = vpop.f32.mrb[48].mxu1  ;;  %v1737_v6 = vpop.f32.mrb[60].mxu0 }
0x1040   :  { %v1478_v39 = vpack.c.bf16 %v1472_v38, %v1472_v38  ;;  %v3074_v41 = vpop.f32.mrb[49].mxu1  ;;  %v1738_v10 = vadd.f32 %v3516_v9, %v1737_v6  ;;  %v3110_v11 = vpop.f32.mrb[61].mxu0 }
0x1041   :  { %v1475_v42 = vpop.f32.mrb[50].mxu1  ;;  %v1740_v12 = vpop.f32.mrb[62].mxu0 }
0x1042   :  { %v3075_v43 = vpop.f32.mrb[51].mxu1  ;;  %3087 = vmatmul.mubr.msk.bf16.vlgmr.msra.gmra.mrb[52].mxu1 %vm244_vm4, %v1478_v39  ;;  %v1744_v13 = vmax.f32 %v1738_v10, 0.0  ;;  %v1741_v7 = vadd.f32 %v3516_v9, %v1740_v12  ;;  %v3111_v14 = vpop.f32.mrb[63].mxu0 }
0x1043   :  { %3099 = vmatpush3.bf16.msra.mxu1 %v3583_v59  ;;  %3102 = vmatprep.mubr.msk.bf16.mxu1 %vm3384_vm0, %v3383_v1 }
0x1044   :  { %3100 = vmatprep.subr.bf16.mxu1 %v3383_v1  ;;  %v1745_v15 = vmax.f32 %v1741_v7, 0.0 }
0x1046   :  { %v1746_v16 = vpack.c.bf16 %v1745_v15, %v1744_v13 }
0x1047   :  { %3101 = vmatpush3.bf16.msra.mxu1 %v3592_v62  ;;  %v1828_v8 = vpop.f32.mrb[64].mxu0 }
0x1048   :  { %3112 = vmatprep.subr.bf16.mxu1 %v3383_v1 }
0x1115   :  { %v1562_v44 = vpop.f32.mrb[52].mxu1 }
0x1116   :  { %v1563_v45 = vadd.f32 %v1562_v44, %v1519_v23  ;;  %v3088_v46 = vpop.f32.mrb[53].mxu1  ;;  %v3122_v23 = vpop.f32.mrb[65].mxu0 }
0x1117   :  { %v1565_v47 = vpop.f32.mrb[54].mxu1  ;;  %v1831_v24 = vpop.f32.mrb[66].mxu0  ;;  %v3945_v23 = vld [vmem:[%s4088_s5] sm:$0xff]  }
0x1118   :  { %v1608_v48 = vadd.f32 %v1602_v30, %v1563_v45  ;;  %v3089_v49 = vpop.f32.mrb[55].mxu1  ;;  %v3123_v26 = vpop.f32.mrb[67].mxu0  ;;  %v3954_v24 = vld [vmem:[%s4088_s5 + $0x8] sm:$0xff]  }
0x111a   :  { %v1609_v50 = vadd.f32 %v3556_v40, %v1608_v48 }
0x111c   :  { %3293 = vtanh.f32 %v1609_v50  ;;  %v2728_v52 = vmul.f32 -1.442695, %v1609_v50 }
0x111e   :  { %3295 = vpow2.f32 %v2728_v52 }
0x1126   :  { %v3294_v51 = vpop.eup %3293 }
0x1127   :  { %1619 = vrot.lane.b32.xlu1 %v3294_v51, %s3385_s25  ;;  %v3257_v51 = vld [vmem:[%s4084_s1 + $0x30] sm:$0xff]  }
0x1128   :  { %v3296_v53 = vpop.eup %3295 }
0x1129   :  { %v1613_v54 = vadd.f32 1.0, %v3296_v53 }
0x112b   :  { %3297 = vrcp.f32 %v1613_v54 }
0x1135   :  { %v3298_v55 = vpop.eup %3297 }
0x1136   :  { %v1617_v58 = vmul.f32 %v3298_v55, %v3776_v2 }
0x1199   :  { %v1620_v56 = vpop.permute.xlu1 %1619 }
0x119a   :  { %v1622_v57 = vmul.f32 %v3298_v55, %v1620_v56 }
0x119c   :  { %1624 = vrot.lane.b32.xlu0 %v1622_v57, %s3386_s6  ;;  %v3906_v57 = vld [vmem:[%s4090_s7] sm:$0xff]  }
0x120e   :  { %v1625_v61 = vpop.permute.xlu0 %1624 }
0x120f   :  { %v3836_v3 = vadd.f32 %v1625_v61, %v1617_v58  ;;  %v3923_v61 = vld [vmem:[%s4087_s4] ss:$0 sm:$0xff]  ;;  %s2629_s4 = sshll.u32 %s3388_s21, 4  ;;  %s2630_s4 = int_to_ptr.vmem [resolvable:$true] %s2629_s4 }
0x1210   :  { %s3335_s22 = scalar_lea.vmem %s2630_s4, 32  ;;  %p3340_p1 = scmp.lt.s32.totalorder %s2630_s4, %s2630_s4 }
0x1211   :  { %3299 = vtanh.f32 %v3836_v3  ;;  %p3336_p0 = scmp.ne.s32.totalorder %s2630_s4, %s3335_s22  ;;  %p3341_p2 = scmp.lt.s32.totalorder %s3335_s22, %s3335_s22 }
0x1213   :  { %p3342_p3 = por %p3341_p2, %p3340_p1 }
0x1215   :  { %p3343_p4 = pnand %p3342_p3, %p3336_p0 }
0x121b   :  { %v3300_v2 = vpop.eup %3299 }
0x121c   :  { %1630 = vrot.lane.b32.xlu1 %v3300_v2, %s3385_s25 }
0x128e   :  { %v1631_v17 = vpop.permute.xlu1 %1630 }
0x128f   :  { %v1633_v18 = vmul.f32 %v3298_v55, %v1631_v17  ;;  %v2754_v55 = vld [vmem:[%s4085_s2 + $0xc] sm:$0x3] }
0x1290   :  { %v2099_v56 = vpack.c.bf16 %v2754_v55, %v2754_v55 }
0x1291   :  { %v1634_v22 = vpack.c.bf16 %v1633_v18, %v1633_v18 }
0x1293   :  { %1636 = vrot.lane.b32.xlu0 %v1634_v22, %s3386_s6 }
0x1305   :  { %v1637_v27 = vpop.permute.xlu0 %1636 }
0x1306   :  { %3103 = vmatmul.mubr.msk.bf16.vlgmr.msra.gmra.mrb[56].mxu1 %vm244_vm4, %v1637_v27  ;;  %3137 = vmatmul.mubr.msk.bf16.vlgmr.msra.gmra.mrb[68].mxu0 %vm244_vm4, %v1637_v27 }
0x1307   :  { %3113 = vmatpush3.bf16.msra.mxu1 %v1746_v16  ;;  %3114 = vmatprep.mubr.msk.bf16.mxu1 %vm3384_vm0, %v3383_v1 }
0x1308   :  { %3124 = vmatprep.subr.bf16.mxu1 %v3383_v1  ;;  %3150 = vmatprep.mubr.msk.bf16.mxu0 %vm3384_vm0, %v3383_v1 }
0x1309   :  { %3149 = vmatpush3.bf16.msra.mxu0 %v3257_v51  ;;  %v3259_v51 = vld [vmem:[%s4084_s1 + $0x38] sm:$0xff]  }
0x130a   :  { %3160 = vmatprep.subr.bf16.mxu0 %v3383_v1 }
0x130e   :  { %3115 = vmatmul.mubr.msk.bf16.vlgmr.msra.gmra.mrb[60].mxu1 %vm90_vm1, %v3523_v19 }
0x130f   :  { %3125 = vmatpush3.bf16.msra.mxu1 %v3528_v20  ;;  %3128 = vmatprep.mubr.msk.bf16.mxu1 %vm3384_vm0, %v3383_v1 }
0x1310   :  { %3126 = vmatprep.subr.bf16.mxu1 %v3383_v1 }
0x1313   :  { %3127 = vmatpush3.bf16.msra.mxu1 %v3537_v21 }
0x1314   :  { %3140 = vmatprep.subr.bf16.mxu1 %v3383_v1 }
0x13d9   :  { %v1675_v9 = vpop.f32.mrb[56].mxu1  ;;  %v1911_v28 = vpop.f32.mrb[68].mxu0 }
0x13da   :  { %v1676_v29 = vadd.f32 %v3626_v25, %v1675_v9  ;;  %v3104_v30 = vpop.f32.mrb[57].mxu1  ;;  %v3138_v31 = vpop.f32.mrb[69].mxu0 }
0x13db   :  { %v1678_v32 = vpop.f32.mrb[58].mxu1  ;;  %v1914_v33 = vpop.f32.mrb[70].mxu0 }
0x13dc   :  { %2730 = vst.msk [vmem:[%s4096_s13 + $0x8] sm:$0x3] %vm445_vm5, %v1676_v29  ;;  %v3105_v19 = vpop.f32.mrb[59].mxu1  ;;  %v3139_v20 = vpop.f32.mrb[71].mxu0 }
0x13e1   :  { %v1781_v34 = vpop.f32.mrb[60].mxu1 }
0x13e2   :  { %v1787_v35 = vpack.c.bf16 %v1781_v34, %v1781_v34  ;;  %v3116_v21 = vpop.f32.mrb[61].mxu1 }
0x13e3   :  { %v1784_v36 = vpop.f32.mrb[62].mxu1 }
0x13e4   :  { %v3117_v37 = vpop.f32.mrb[63].mxu1  ;;  %3129 = vmatmul.mubr.msk.bf16.vlgmr.msra.gmra.mrb[64].mxu1 %vm244_vm4, %v1787_v35  ;;  %v3976_v36 = vld [vmem:[%s4094_s11 + $0x8] sm:$0xff]  }
0x13e5   :  { %3141 = vmatpush3.bf16.msra.mxu1 %v3583_v59  ;;  %3144 = vmatprep.mubr.msk.bf16.mxu1 %vm3384_vm0, %v3383_v1 }
0x13e6   :  { %3142 = vmatprep.subr.bf16.mxu1 %v3383_v1 }
0x13e9   :  { %3143 = vmatpush3.bf16.msra.mxu1 %v3592_v62 }
0x13ea   :  { %3154 = vmatprep.subr.bf16.mxu1 %v3383_v1 }
0x14b7   :  { %v1871_v38 = vpop.f32.mrb[64].mxu1 }
0x14b8   :  { %v1872_v39 = vadd.f32 %v1871_v38, %v1828_v8  ;;  %v3130_v41 = vpop.f32.mrb[65].mxu1  ;;  %v3938_v8 = vld [vmem:[%s4086_s3] sm:$0x1] }
0x14b9   :  { %v1874_v42 = vpop.f32.mrb[66].mxu1 }
0x14ba   :  { %v1917_v43 = vadd.f32 %v1911_v28, %v1872_v39  ;;  %v3131_v44 = vpop.f32.mrb[67].mxu1 }
0x14bb   :  { %v3983_v44 = vld [vmem:[%s4091_s8] ss:$0 sm:$0xff] }
0x14bc   :  { %v1918_v45 = vadd.f32 %v3556_v40, %v1917_v43  ;;  %v3258_v40 = vld [vmem:[%s4083_s0 + $0x30] sm:$0xff]  }
0x14bd   :  { %3151 = vmatmul.mubr.msk.bf16.vlgmr.msra.gmra.mrb[72].mxu0 %vm90_vm1, %v3258_v40  ;;  %v3260_v40 = vld [vmem:[%s4083_s0 + $0x38] sm:$0xff]  }
0x14be   :  { %3301 = vtanh.f32 %v1918_v45  ;;  %v2743_v59 = vmul.f32 -1.442695, %v1918_v45  ;;  %3161 = vmatpush3.bf16.msra.mxu0 %v3492_v5  ;;  %3162 = vmatprep.mubr.msk.bf16.mxu0 %vm3384_vm0, %v3383_v1 }
0x14bf   :  { %3174 = vmatprep.subr.bf16.mxu0 %v3383_v1 }
0x14c0   :  { %3303 = vpow2.f32 %v2743_v59 }
0x14c5   :  { %3163 = vmatmul.mubr.msk.bf16.vlgmr.msra.gmra.mrb[76].mxu0 %vm184_vm3, %v2099_v56  ;;  %v2769_v56 = vld [vmem:[%s4085_s2 + $0xe] sm:$0x3] }
0x14c6   :  { %3175 = vmatpush3.bf16.msra.mxu0 %v3906_v57  ;;  %3178 = vmatprep.mubr.msk.bf16.mxu0 %vm3384_vm0, %v3383_v1 }
0x14c7   :  { %3176 = vmatprep.subr.bf16.mxu0 %v3383_v1 }
0x14c8   :  { %v3302_v46 = vpop.eup %3301 }
0x14c9   :  { %1928 = vrot.lane.b32.xlu1 %v3302_v46, %s3385_s25 }
0x14ca   :  { %v3304_v47 = vpop.eup %3303  ;;  %3177 = vmatpush3.bf16.msra.mxu0 %v3915_v63 }
0x14cb   :  { %v1922_v48 = vadd.f32 1.0, %v3304_v47  ;;  %3190 = vmatprep.subr.bf16.mxu0 %v3383_v1 }
0x14cd   :  { %3305 = vrcp.f32 %v1922_v48 }
0x14d7   :  { %v3306_v62 = vpop.eup %3305 }
0x14d8   :  { %v1926_v52 = vmul.f32 %v3306_v62, %v3836_v3 }
0x153b   :  { %v1929_v49 = vpop.permute.xlu1 %1928 }
0x153c   :  { %v1931_v50 = vmul.f32 %v3306_v62, %v1929_v49 }
0x153e   :  { %1933 = vrot.lane.b32.xlu0 %v1931_v50, %s3386_s6 }
0x1590   :  { %v2046_v58 = vpop.f32.mrb[72].mxu0 }
0x1591   :  { %v2047_v3 = vadd.f32 %v3923_v61, %v2046_v58  ;;  %v3152_v0 = vpop.f32.mrb[73].mxu0 }
0x1592   :  { %v2049_v4 = vpop.f32.mrb[74].mxu0 }
0x1593   :  { %v2053_v2 = vmax.f32 %v2047_v3, 0.0  ;;  %v2050_v6 = vadd.f32 %v3923_v61, %v2049_v4  ;;  %v3153_v10 = vpop.f32.mrb[75].mxu0 }
0x1595   :  { %v2054_v11 = vmax.f32 %v2050_v6, 0.0 }
0x1597   :  { %v2055_v12 = vpack.c.bf16 %v2054_v11, %v2053_v2 }
0x1598   :  { %v2137_v15 = vpop.f32.mrb[76].mxu0 }
0x1599   :  { %v3164_v16 = vpop.f32.mrb[77].mxu0 }
0x159a   :  { %v2140_v17 = vpop.f32.mrb[78].mxu0 }
0x159b   :  { %v3165_v18 = vpop.f32.mrb[79].mxu0 }
0x159c   :  { %v4033_v18 = vld [vmem:[%s4095_s12] ss:$0 sm:$0xff]  ;;  %s3387_s12 = smov 96  }
0x15b0   :  { %v1934_v53 = vpop.permute.xlu0 %1933 }
0x15b1   :  { %v3896_v54 = vadd.f32 %v1934_v53, %v1926_v52 }
0x15b3   :  { %3307 = vtanh.f32 %v3896_v54 }
0x15bd   :  { %v3308_v60 = vpop.eup %3307 }
0x15be   :  { %1939 = vrot.lane.b32.xlu1 %v3308_v60, %s3385_s25  ;;  %v2408_v60 = vpack.c.bf16 %v2769_v56, %v2769_v56 }
0x1630   :  { %v1940_v13 = vpop.permute.xlu1 %1939 }
0x1631   :  { %v1942_v7 = vmul.f32 %v3306_v62, %v1940_v13 }
0x1633   :  { %v1943_v14 = vpack.c.bf16 %v1942_v7, %v1942_v7 }
0x1635   :  { %1945 = vrot.lane.b32.xlu0 %v1943_v14, %s3386_s6 }
0x16a7   :  { %v1946_v22 = vpop.permute.xlu0 %1945 }
0x16a8   :  { %3145 = vmatmul.mubr.msk.bf16.vlgmr.msra.gmra.mrb[68].mxu1 %vm244_vm4, %v1946_v22  ;;  %3179 = vmatmul.mubr.msk.bf16.vlgmr.msra.gmra.mrb[80].mxu0 %vm244_vm4, %v1946_v22 }
0x16a9   :  { %3155 = vmatpush3.bf16.msra.mxu1 %v2055_v12  ;;  %3156 = vmatprep.mubr.msk.bf16.mxu1 %vm3384_vm0, %v3383_v1 }
0x16aa   :  { %3166 = vmatprep.subr.bf16.mxu1 %v3383_v1  ;;  %3192 = vmatprep.mubr.msk.bf16.mxu0 %vm3384_vm0, %v3383_v1 }
0x16ab   :  { %3191 = vmatpush3.bf16.msra.mxu0 %v3259_v51 }
0x16ac   :  { %3202 = vmatprep.subr.bf16.mxu0 %v3383_v1 }
0x16b0   :  { %3157 = vmatmul.mubr.msk.bf16.vlgmr.msra.gmra.mrb[72].mxu1 %vm90_vm1, %v3938_v8  ;;  %3193 = vmatmul.mubr.msk.bf16.vlgmr.msra.gmra.mrb[84].mxu0 %vm90_vm1, %v3260_v40 }
0x16b1   :  { %3167 = vmatpush3.bf16.msra.mxu1 %v3945_v23  ;;  %3170 = vmatprep.mubr.msk.bf16.mxu1 %vm3384_vm0, %v3383_v1 }
0x16b2   :  { %3168 = vmatprep.subr.bf16.mxu1 %v3383_v1  ;;  %3203 = vmatpush3.bf16.msra.mxu0 %v3492_v5 }
0x16b3   :  { %3204 = vmatprep.mubr.msk.bf16.mxu0 %vm3384_vm0, %v3383_v1  ;;  %3216 = vmatprep.subr.bf16.mxu0 %v3383_v1 }
0x16b5   :  { %3169 = vmatpush3.bf16.msra.mxu1 %v3954_v24 }
0x16b6   :  { %3182 = vmatprep.subr.bf16.mxu1 %v3383_v1 }
0x16b8   :  { %3205 = vmatmul.mubr.msk.bf16.vlgmr.msra.gmra.mrb[88].mxu0 %vm184_vm3, %v2408_v60 }
0x16b9   :  { %3217 = vmatpush3.bf16.msra.mxu0 %v3906_v57  ;;  %3220 = vmatprep.mubr.msk.bf16.mxu0 %vm3384_vm0, %v3383_v1 }
0x16ba   :  { %3218 = vmatprep.subr.bf16.mxu0 %v3383_v1 }
0x16bd   :  { %3219 = vmatpush3.bf16.msra.mxu0 %v3915_v63 }
0x177b   :  { %v1984_v26 = vpop.f32.mrb[68].mxu1  ;;  %v2220_v27 = vpop.f32.mrb[80].mxu0 }
0x177c   :  { %v1985_v9 = vadd.f32 %v3626_v25, %v1984_v26  ;;  %v3146_v28 = vpop.f32.mrb[69].mxu1  ;;  %v3180_v29 = vpop.f32.mrb[81].mxu0  ;;  %v3967_v25 = vld [vmem:[%s4094_s11] sm:$0xff]  }
0x177d   :  { %v1987_v30 = vpop.f32.mrb[70].mxu1  ;;  %v2223_v31 = vpop.f32.mrb[82].mxu0 }
0x177e   :  { %2745 = vst.msk [vmem:[%s4096_s13 + $0xa] sm:$0x3] %vm445_vm5, %v1985_v9  ;;  %v3147_v32 = vpop.f32.mrb[71].mxu1  ;;  %v3181_v33 = vpop.f32.mrb[83].mxu0 }
0x1783   :  { %v2090_v19 = vpop.f32.mrb[72].mxu1 }
0x1784   :  { %v2096_v20 = vpack.c.bf16 %v2090_v19, %v2090_v19  ;;  %v3158_v34 = vpop.f32.mrb[73].mxu1 }
0x1785   :  { %v2093_v35 = vpop.f32.mrb[74].mxu1 }
0x1786   :  { %v3159_v21 = vpop.f32.mrb[75].mxu1  ;;  %3171 = vmatmul.mubr.msk.bf16.vlgmr.msra.gmra.mrb[76].mxu1 %vm244_vm4, %v2096_v20 }
0x1787   :  { %3183 = vmatpush3.bf16.msra.mxu1 %v3967_v25  ;;  %3186 = vmatprep.mubr.msk.bf16.mxu1 %vm3384_vm0, %v3383_v1 }
0x1788   :  { %3184 = vmatprep.subr.bf16.mxu1 %v3383_v1 }
0x178b   :  { %3185 = vmatpush3.bf16.msra.mxu1 %v3976_v36 }
0x178c   :  { %3196 = vmatprep.subr.bf16.mxu1 %v3383_v1 }
0x1859   :  { %v2180_v37 = vpop.f32.mrb[76].mxu1 }
0x185a   :  { %v2181_v38 = vadd.f32 %v2180_v37, %v2137_v15  ;;  %v3172_v39 = vpop.f32.mrb[77].mxu1 }
0x185b   :  { %v2183_v41 = vpop.f32.mrb[78].mxu1 }
0x185c   :  { %v2226_v42 = vadd.f32 %v2220_v27, %v2181_v38  ;;  %v3173_v43 = vpop.f32.mrb[79].mxu1 }
0x185e   :  { %v2227_v45 = vadd.f32 %v3983_v44, %v2226_v42 }
0x1860   :  { %3309 = vtanh.f32 %v2227_v45  ;;  %v2758_v59 = vmul.f32 -1.442695, %v2227_v45 }
0x1862   :  { %3311 = vpow2.f32 %v2758_v59 }
0x186a   :  { %v3310_v46 = vpop.eup %3309 }
0x186b   :  { %2237 = vrot.lane.b32.xlu1 %v3310_v46, %s3385_s25 }
0x186c   :  { %v3312_v47 = vpop.eup %3311 }
0x186d   :  { %v2231_v48 = vadd.f32 1.0, %v3312_v47 }
0x186f   :  { %3313 = vrcp.f32 %v2231_v48 }
0x1879   :  { %v3314_v62 = vpop.eup %3313 }
0x187a   :  { %v2235_v52 = vmul.f32 %v3314_v62, %v3896_v54  ;;  %v2355_v54 = vpop.f32.mrb[84].mxu0 }
0x187b   :  { %v2356_v58 = vadd.f32 %v3923_v61, %v2355_v54  ;;  %v3194_v3 = vpop.f32.mrb[85].mxu0 }
0x187c   :  { %v2358_v0 = vpop.f32.mrb[86].mxu0 }
0x187d   :  { %v2362_v4 = vmax.f32 %v2356_v58, 0.0  ;;  %v2359_v2 = vadd.f32 %v3923_v61, %v2358_v0  ;;  %v3195_v6 = vpop.f32.mrb[87].mxu0 }
0x187e   :  { %v2446_v7 = vpop.f32.mrb[88].mxu0 }
0x187f   :  { %v2363_v57 = vmax.f32 %v2359_v2, 0.0  ;;  %v3206_v63 = vpop.f32.mrb[89].mxu0 }
0x1880   :  { %v2449_v14 = vpop.f32.mrb[90].mxu0 }
0x1881   :  { %v2364_v10 = vpack.c.bf16 %v2363_v57, %v2362_v4  ;;  %v3207_v15 = vpop.f32.mrb[91].mxu0 }
0x18dd   :  { %v2238_v49 = vpop.permute.xlu1 %2237 }
0x18de   :  { %v2240_v50 = vmul.f32 %v3314_v62, %v2238_v49 }
0x18e0   :  { %2242 = vrot.lane.b32.xlu0 %v2240_v50, %s3386_s6 }
0x1952   :  { %v2243_v53 = vpop.permute.xlu0 %2242 }
0x1953   :  { %v4001_v55 = vadd.f32 %v2243_v53, %v2235_v52 }
0x1955   :  { %3315 = vtanh.f32 %v4001_v55 }
0x195f   :  { %v3316_v5 = vpop.eup %3315 }
0x1960   :  { %2248 = vrot.lane.b32.xlu1 %v3316_v5, %s3385_s25 }
0x19d2   :  { %v2249_v11 = vpop.permute.xlu1 %2248 }
0x19d3   :  { %v2251_v12 = vmul.f32 %v3314_v62, %v2249_v11 }
0x19d5   :  { %v2252_v13 = vpack.c.bf16 %v2251_v12, %v2251_v12 }
0x19d7   :  { %2254 = vrot.lane.b32.xlu0 %v2252_v13, %s3386_s6 }
0x1a49   :  { %v2255_v16 = vpop.permute.xlu0 %2254 }
0x1a4a   :  { %3187 = vmatmul.mubr.msk.bf16.vlgmr.msra.gmra.mrb[80].mxu1 %vm244_vm4, %v2255_v16  ;;  %3221 = vmatmul.mubr.msk.bf16.vlgmr.msra.gmra.mrb[92].mxu0 %vm244_vm4, %v2255_v16 }
0x1a4b   :  { %3197 = vmatpush3.bf16.msra.mxu1 %v2364_v10  ;;  %3198 = vmatprep.mubr.msk.bf16.mxu1 %vm3384_vm0, %v3383_v1 }
0x1a4c   :  { %3208 = vmatprep.subr.bf16.mxu1 %v3383_v1 }
0x1a52   :  { %3199 = vmatmul.mubr.msk.bf16.vlgmr.msra.gmra.mrb[84].mxu1 %vm90_vm1, %v3938_v8 }
0x1a53   :  { %3209 = vmatpush3.bf16.msra.mxu1 %v3945_v23  ;;  %3212 = vmatprep.mubr.msk.bf16.mxu1 %vm3384_vm0, %v3383_v1 }
0x1a54   :  { %3210 = vmatprep.subr.bf16.mxu1 %v3383_v1 }
0x1a57   :  { %3211 = vmatpush3.bf16.msra.mxu1 %v3954_v24 }
0x1a58   :  { %3224 = vmatprep.subr.bf16.mxu1 %v3383_v1 }
0x1b1d   :  { %v2293_v61 = vpop.f32.mrb[80].mxu1  ;;  %v2529_v17 = vpop.f32.mrb[92].mxu0 }
0x1b1e   :  { %v2294_v22 = vadd.f32 %v4033_v18, %v2293_v61  ;;  %v3188_v8 = vpop.f32.mrb[81].mxu1  ;;  %v3222_v23 = vpop.f32.mrb[93].mxu0 }
0x1b1f   :  { %v2296_v26 = vpop.f32.mrb[82].mxu1  ;;  %v2532_v27 = vpop.f32.mrb[94].mxu0 }
0x1b20   :  { %2760 = vst.msk [vmem:[%s4096_s13 + $0xc] sm:$0x3] %vm445_vm5, %v2294_v22  ;;  %v3189_v24 = vpop.f32.mrb[83].mxu1  ;;  %v3223_v9 = vpop.f32.mrb[95].mxu0 }
0x1b25   :  { %v2399_v28 = vpop.f32.mrb[84].mxu1 }
0x1b26   :  { %v2405_v29 = vpack.c.bf16 %v2399_v28, %v2399_v28  ;;  %v3200_v30 = vpop.f32.mrb[85].mxu1 }
0x1b27   :  { %v2402_v31 = vpop.f32.mrb[86].mxu1 }
0x1b28   :  { %v3201_v32 = vpop.f32.mrb[87].mxu1  ;;  %3213 = vmatmul.mubr.msk.bf16.vlgmr.msra.gmra.mrb[88].mxu1 %vm244_vm4, %v2405_v29 }
0x1b29   :  { %3225 = vmatpush3.bf16.msra.mxu1 %v3967_v25  ;;  %3228 = vmatprep.mubr.msk.bf16.mxu1 %vm3384_vm0, %v3383_v1 }
0x1b2a   :  { %3226 = vmatprep.subr.bf16.mxu1 %v3383_v1 }
0x1b2d   :  { %3227 = vmatpush3.bf16.msra.mxu1 %v3976_v36 }
0x1bfb   :  { %v2489_v33 = vpop.f32.mrb[88].mxu1 }
0x1bfc   :  { %v2490_v19 = vadd.f32 %v2489_v33, %v2446_v7  ;;  %v3214_v20 = vpop.f32.mrb[89].mxu1 }
0x1bfd   :  { %v2492_v34 = vpop.f32.mrb[90].mxu1 }
0x1bfe   :  { %v2535_v35 = vadd.f32 %v2529_v17, %v2490_v19  ;;  %v3215_v21 = vpop.f32.mrb[91].mxu1 }
0x1c00   :  { %v2536_v37 = vadd.f32 %v3983_v44, %v2535_v35 }
0x1c02   :  { %3317 = vtanh.f32 %v2536_v37  ;;  %v2773_v25 = vmul.f32 -1.442695, %v2536_v37 }
0x1c04   :  { %3319 = vpow2.f32 %v2773_v25 }
0x1c0c   :  { %v3318_v38 = vpop.eup %3317 }
0x1c0d   :  { %2546 = vrot.lane.b32.xlu1 %v3318_v38, %s3385_s25 }
0x1c0e   :  { %v3320_v39 = vpop.eup %3319 }
0x1c0f   :  { %v2540_v41 = vadd.f32 1.0, %v3320_v39 }
0x1c11   :  { %3321 = vrcp.f32 %v2540_v41 }
0x1c1b   :  { %v3322_v1 = vpop.eup %3321 }
0x1c1c   :  { %v2544_v43 = vmul.f32 %v3322_v1, %v4001_v55 }
0x1c7f   :  { %v2547_v42 = vpop.permute.xlu1 %2546 }
0x1c80   :  { %v2549_v36 = vmul.f32 %v3322_v1, %v2547_v42 }
0x1c82   :  { %2551 = vrot.lane.b32.xlu0 %v2549_v36, %s3386_s6 }
0x1cf4   :  { %v2552_v45 = vpop.permute.xlu0 %2551 }
0x1cf5   :  { %v2554_v46 = vadd.f32 %v2552_v45, %v2544_v43 }
0x1cf7   :  { %3323 = vtanh.f32 %v2554_v46 }
0x1d01   :  { %v3324_v44 = vpop.eup %3323 }
0x1d02   :  { %2557 = vrot.lane.b32.xlu1 %v3324_v44, %s3385_s25  ;;  %s3389_s25 = smov [#allocation4]  }
0x1d03   :  { %s2639_s7 = sshll.u32 %s3389_s25, 4  ;;  %s2640_s7 = int_to_ptr.vmem [resolvable:$true] %s2639_s7 }
0x1d74   :  { %v2558_v59 = vpop.permute.xlu1 %2557 }
0x1d75   :  { %v2560_v47 = vmul.f32 %v3322_v1, %v2558_v59 }
0x1d77   :  { %v2561_v48 = vpack.c.bf16 %v2560_v47, %v2560_v47  ;;  %2611 = vrot.lane.b32.xlu1 %v2560_v47, %s3386_s6 }
0x1d79   :  { %2563 = vrot.lane.b32.xlu0 %v2561_v48, %s3386_s6 }
0x1d7d   :  { %2617 = vrot.lane.b32.xlu0 %v2554_v46, %s3387_s12 }
0x1de9   :  { %v2612_v62 = vpop.permute.xlu1 %2611 }
0x1dea   :  { %2615 = vst.msk [vmem:[#allocation2] sm:$0x3] %vm2614_vm6, %v2612_v62 }
0x1deb   :  { %v2564_v49 = vpop.permute.xlu0 %2563 }
0x1dec   :  { %3229 = vmatmul.mubr.msk.bf16.vlgmr.msra.gmra.mrb[92].mxu1 %vm244_vm4, %v2564_v49 }
0x1def   :  { %v2618_v50 = vpop.permute.xlu0 %2617 }
0x1df0   :  { %2620 = vst.msk [vmem:[#allocation4] sm:$0x3] %vm2614_vm6, %v2618_v50 }
0x1df1   :  { %3346 = shalt.err (!%p3343_p4)
}
0x1df2   :  { %s3347_s9 = scalar_lea.hbm %s4097_s14, 32 }
0x1df3   :  { %p3348_p5 = scmp.ne.s32.totalorder %s4097_s14, %s3347_s9  ;;  %p3351_p6 = scmp.lt.u32.totalorder %s3347_s9, %s4097_s14 }
0x1df5   :  { %p3353_p7 = pnand %p3351_p6, %p3348_p5 }
0x1df7   :  { %3356 = shalt.err (!%p3353_p7)
}
0x1df8   :  { %2632 = dma.vmem_to_hbm [thread:$0]  %s2630_s4, 32, %s4097_s14, [#allocation3]  }
0x1df9   :  { %s3357_s29 = scalar_lea.vmem %s2640_s7, 32  ;;  %p3362_p9 = scmp.lt.s32.totalorder %s2640_s7, %s2640_s7 }
0x1dfa   :  { %p3358_p8 = scmp.ne.s32.totalorder %s2640_s7, %s3357_s29  ;;  %p3363_p10 = scmp.lt.s32.totalorder %s3357_s29, %s3357_s29 }
0x1dfc   :  { %p3364_p11 = por %p3363_p10, %p3362_p9 }
0x1dfe   :  { %p3365_p12 = pnand %p3364_p11, %p3358_p8 }
0x1e00   :  { %3368 = shalt.err (!%p3365_p12)
}
0x1e01   :  { %s3369_s11 = scalar_lea.hbm %s4098_s15, 32 }
0x1e02   :  { %p3370_p13 = scmp.ne.s32.totalorder %s4098_s15, %s3369_s11  ;;  %p3373_p0 = scmp.lt.u32.totalorder %s3369_s11, %s4098_s15 }
0x1e04   :  { %p3375_p1 = pnand %p3373_p0, %p3370_p13 }
0x1e06   :  { %3378 = shalt.err (!%p3375_p1)
}
0x1e07   :  { %2642 = dma.vmem_to_hbm [thread:$0]  %s2640_s7, 32, %s4098_s15, [#allocation5]  }
0x1ebf   :  { %v2602_v51 = vpop.f32.mrb[92].mxu1 }
0x1ec0   :  { %v2603_v40 = vadd.f32 %v4033_v18, %v2602_v51  ;;  %v3230_v52 = vpop.f32.mrb[93].mxu1 }
0x1ec1   :  { %v2605_v53 = vpop.f32.mrb[94].mxu1 }
0x1ec2   :  { %2775 = vst.msk [vmem:[%s4096_s13 + $0xe] sm:$0x3] %vm445_vm5, %v2603_v40  ;;  %v3231_v55 = vpop.f32.mrb[95].mxu1 }
0x1ec3   :  { %3379 = dma.done.wait [#allocation3], 32  }
0x1ec4   :  { %3380 = vsyncadd [#allocation3], 4294967264 }
0x1ec5   :  { %3381 = dma.done.wait [#allocation5], 32  }
0x1ec6   :  { %3382 = vsyncadd [#allocation5], 4294967264 }
0x1ec7   :  { %2651 = vsyncpa [#allocation3], 1 }
0x1ec8   :  { %2652 = vsyncpa [#allocation5], 1 }

</bundles_post_ra>
